<compile_context>
chip_gen: v7x
topology: tpu7x:2x2x1
jax: 0.10.0
libtpu: 0.0.40
codegen_flags: <defaults>
</compile_context>

<pallas_src>
import functools

import jax
import jax.numpy as jnp
from jax.experimental import pallas as pl
from jax.experimental.pallas import tpu as pltpu


def _round_up(v, m):
    return (v + m - 1) // m * m


def _pad2d(a, rows, cols):
    return jnp.pad(a, ((0, rows - a.shape[0]), (0, cols - a.shape[1])))


def _sage_conv_kernel(adj_ref, xn_ref, xr_ref, wl_ref, wr_ref, b_ref,
                      o_ref, acc_ref, *, apply_relu):
    """One SAGEConv layer, tiled over (row tile i, neighbor tile k)."""
    k = pl.program_id(1)

    @pl.when(k == 0)
    def _init():
        acc_ref[...] = jnp.zeros_like(acc_ref)

    # Mean-neighbor aggregation: accumulate A[i, k] @ X[k] into f32 scratch (MXU).
    acc_ref[...] += jnp.dot(adj_ref[...], xn_ref[...],
                            preferred_element_type=jnp.float32)

    @pl.when(k == pl.num_programs(1) - 1)
    def _finalize():
        agg = acc_ref[...].astype(wl_ref.dtype)
        out = (jnp.dot(agg, wl_ref[...], preferred_element_type=jnp.float32)
               + jnp.dot(xr_ref[...], wr_ref[...],
                         preferred_element_type=jnp.float32)
               + b_ref[...])                      # (1, Fout) broadcasts over rows
        if apply_relu:
            out = jnp.maximum(out, 0.0)
        o_ref[...] = out.astype(o_ref.dtype)


def _choose_tiles(n):
    """Node-dim padding and (row tile, neighbor tile) sizes, all 128-aligned."""
    if n <= 256:
        n_pad = _round_up(max(n, 1), 128)
        return n_pad, n_pad, n_pad
    n_pad = _round_up(n, 512)       # multiple of lcm(TM, TK)
    return n_pad, 256, 512


def sage_conv(x_pad_bf16, adj_pad_bf16, w_l, w_r, b, *, apply_relu, tm, tk):
    """One SAGEConv layer on padded inputs; returns padded float32 output."""
    n_pad, f_in_p = x_pad_bf16.shape
    f_out_p = w_l.shape[1]
    grid = (n_pad // tm, n_pad // tk)
    kernel = functools.partial(_sage_conv_kernel, apply_relu=apply_relu)

    cost = pl.CostEstimate(
        flops=int(2 * n_pad * n_pad * f_in_p + 4 * n_pad * f_in_p * f_out_p),
        transcendentals=0,
        bytes_accessed=int(n_pad * n_pad * 2                        # adjacency (bf16)
                           + n_pad * f_in_p * 2 * (grid[0] + 1)     # x streamed per row tile
                           + n_pad * f_out_p * 4                    # f32 output
                           + 2 * f_in_p * f_out_p * 2 + f_out_p * 4),
    )

    return pl.pallas_call(
        kernel,
        out_shape=jax.ShapeDtypeStruct((n_pad, f_out_p), jnp.float32),
        grid=grid,
        in_specs=[
            pl.BlockSpec((tm, tk), lambda i, k: (i, k)),           # adjacency block
            pl.BlockSpec((tk, f_in_p), lambda i, k: (k, 0)),       # x as neighbors
            pl.BlockSpec((tm, f_in_p), lambda i, k: (i, 0)),       # x as root nodes
            pl.BlockSpec((f_in_p, f_out_p), lambda i, k: (0, 0)),  # W_l (VMEM-resident)
            pl.BlockSpec((f_in_p, f_out_p), lambda i, k: (0, 0)),  # W_r (VMEM-resident)
            pl.BlockSpec((1, f_out_p), lambda i, k: (0, 0)),       # bias (VMEM-resident)
        ],
        out_specs=pl.BlockSpec((tm, f_out_p), lambda i, k: (i, 0)),
        scratch_shapes=[pltpu.VMEM((tm, f_in_p), jnp.float32)],
        compiler_params=pltpu.CompilerParams(
            dimension_semantics=("parallel", "arbitrary")),
        cost_estimate=cost,
    )(adj_pad_bf16, x_pad_bf16, x_pad_bf16, w_l, w_r, b)


def sage_forward(x, adj_norm, params):
    """SAGE.forward: relu on all but last layer; dropout is identity at inference."""
    n, f0 = x.shape
    out_channels = params[-1][0].shape[1]
    n_pad, tm, tk = _choose_tiles(n)

    adj_p = _pad2d(adj_norm, n_pad, n_pad).astype(jnp.bfloat16)
    h = _pad2d(x, n_pad, _round_up(f0, 128)).astype(jnp.float32)

    num_layers = len(params)
    for i, (w_l, w_r, b) in enumerate(params):
        f_in, f_out = w_l.shape
        f_in_p, f_out_p = _round_up(f_in, 128), _round_up(f_out, 128)
        w_l_p = _pad2d(w_l, f_in_p, f_out_p).astype(jnp.bfloat16)
        w_r_p = _pad2d(w_r, f_in_p, f_out_p).astype(jnp.bfloat16)
        b_p = _pad2d(b, 1, f_out_p).astype(jnp.float32)
        h = sage_conv(h.astype(jnp.bfloat16), adj_p, w_l_p, w_r_p, b_p,
                      apply_relu=(i != num_layers - 1), tm=tm, tk=tk)
        # F.dropout(training=False) is the identity -> nothing to do.
    return h[:n, :out_channels]


def _glorot(key, shape):
    fan_in, fan_out = shape
    limit = (6.0 / (fan_in + fan_out)) ** 0.5
    return jax.random.uniform(key, shape, jnp.float32, -limit, limit)


def init_sage_params(key, in_channels, hidden_channels, out_channels, num_layers):
    dims = [in_channels] + [hidden_channels] * (num_layers - 1) + [out_channels]
    params = []
    for layer in range(num_layers):
        f_in, f_out = dims[layer], dims[layer + 1]
        key, k1, k2 = jax.random.split(key, 3)
        w_l = _glorot(k1, (f_in, f_out))   # lin_l (neighbor path), has bias
        w_r = _glorot(k2, (f_in, f_out))   # lin_r (root path), no bias
        b = jnp.zeros((1, f_out), jnp.float32)
        params.append((w_l, w_r, b))
    return params


def reference_forward_matched(x, adj_norm, params):
    """Plain-JAX reference with the same bf16-in / f32-accumulate casting as the kernel."""
    num_layers = len(params)
    h = x
    adj_b = adj_norm.astype(jnp.bfloat16)
    for i, (w_l, w_r, b) in enumerate(params):
        hb = h.astype(jnp.bfloat16)
        agg = jnp.dot(adj_b, hb, preferred_element_type=jnp.float32)
        out = (jnp.dot(agg.astype(jnp.bfloat16), w_l.astype(jnp.bfloat16),
                       preferred_element_type=jnp.float32)
               + jnp.dot(hb, w_r.astype(jnp.bfloat16),
                         preferred_element_type=jnp.float32)
               + b)
        if i != num_layers - 1:
            out = jnp.maximum(out, 0.0)
        h = out
    return h


if __name__ == "__main__":
    key = jax.random.PRNGKey(0)

    # Small synthetic graph + model config (non-128-aligned dims exercise padding,
    # N > tile sizes exercises the tiled accumulation path).
    N = 600
    in_channels = 100
    hidden_channels = 200
    out_channels = 47
    num_layers = 3
    # dropout = 0.5   # identity at inference; not applied.

    kx, kadj, kparams = jax.random.split(key, 3)

    x = jax.random.normal(kx, (N, in_channels), jnp.float32)

    # Random undirected adjacency (no self-loops), row-normalized for mean aggregation.
    a = (jax.random.uniform(kadj, (N, N)) < 0.05).astype(jnp.float32)
    a = jnp.maximum(a, a.T) * (1.0 - jnp.eye(N, dtype=jnp.float32))
    deg = jnp.clip(a.sum(axis=1, keepdims=True), 1.0, None)
    adj_norm = a / deg

    params = init_sage_params(kparams, in_channels, hidden_channels,
                              out_channels, num_layers)

    out = jax.block_until_ready(sage_forward(x, adj_norm, params))

    ref = reference_forward_matched(x, adj_norm, params)
    assert out.shape == (N, out_channels)
    assert jnp.allclose(out, ref, atol=2e-2, rtol=2e-2), \
        float(jnp.max(jnp.abs(out - ref)))

    print("KERNEL_OK")
</pallas_src>

<mosaic_0001>
module attributes {stable_mosaic.version = 11 : i64} {
  func.func @_sage_conv_kernel(%arg0: i32, %arg1: i32, %arg2: memref<256x512xbf16, #tpu.memory_space<vmem>>, %arg3: memref<512x128xbf16, #tpu.memory_space<vmem>>, %arg4: memref<256x128xbf16, #tpu.memory_space<vmem>>, %arg5: memref<128x256xbf16, #tpu.memory_space<vmem>>, %arg6: memref<128x256xbf16, #tpu.memory_space<vmem>>, %arg7: memref<1x256xf32, #tpu.memory_space<vmem>>, %arg8: memref<256x256xf32, #tpu.memory_space<vmem>>, %arg9: memref<256x128xf32, #tpu.memory_space<vmem>>) attributes {dimension_semantics = [#tpu.dimension_semantics<parallel>, #tpu.dimension_semantics<arbitrary>], iteration_bounds = array<i64: 4, 2>, scalar_prefetch = 0 : i64, scratch_operands = 1 : i64, tpu.core_type = #tpu.core_type<tc>, window_params = [{transform_indices = @transform_0, window_bounds = array<i64: 256, 512>}, {transform_indices = @transform_1, window_bounds = array<i64: 512, 128>}, {transform_indices = @transform_2, window_bounds = array<i64: 256, 128>}, {pipeline_mode = #tpu.pipeline_mode<synchronous>, transform_indices = @transform_3, window_bounds = array<i64: 128, 256>}, {pipeline_mode = #tpu.pipeline_mode<synchronous>, transform_indices = @transform_4, window_bounds = array<i64: 128, 256>}, {pipeline_mode = #tpu.pipeline_mode<synchronous>, transform_indices = @transform_5, window_bounds = array<i64: 1, 256>}, {transform_indices = @transform_6, window_bounds = array<i64: 256, 256>}]} {
    %c0_i32 = arith.constant 0 : i32
    %0 = arith.cmpi eq, %arg1, %c0_i32 : i32
    %1 = arith.extui %0 : i1 to i32
    %c0_i32_0 = arith.constant 0 : i32
    %2 = arith.cmpi ne, %1, %c0_i32_0 : i32
    scf.if %2 {
      %cst_9 = arith.constant 0.000000e+00 : f32
      %12 = vector.broadcast %cst_9 : f32 to vector<256x128xf32>
      %c0_10 = arith.constant 0 : index
      %c0_11 = arith.constant 0 : index
      %13 = vector.load %arg9[%c0_10, %c0_11] : memref<256x128xf32, #tpu.memory_space<vmem>>, vector<256x128xf32>
      tpu.vector_store %arg9[%c0_10, %c0_11], %12 {strides = array<i32>} : memref<256x128xf32, #tpu.memory_space<vmem>>, vector<256x128xf32>,
    } else {
    }
    %c0 = arith.constant 0 : index
    %c0_1 = arith.constant 0 : index
    %3 = vector.load %arg9[%c0, %c0_1] : memref<256x128xf32, #tpu.memory_space<vmem>>, vector<256x128xf32>
    %c0_2 = arith.constant 0 : index
    %c0_3 = arith.constant 0 : index
    %4 = vector.load %arg2[%c0_2, %c0_3] : memref<256x512xbf16, #tpu.memory_space<vmem>>, vector<256x512xbf16>
    %c0_4 = arith.constant 0 : index
    %c0_5 = arith.constant 0 : index
    %5 = vector.load %arg3[%c0_4, %c0_5] : memref<512x128xbf16, #tpu.memory_space<vmem>>, vector<512x128xbf16>
    %cst = arith.constant dense<0.000000e+00> : vector<256x128xf32>
    %6 = tpu.matmul %4, %5, %cst {dimension_numbers = #tpu.dot_dimension_numbers<[1], [0], [0], [1], [0, 0, 1, 1], [], []>} : vector<256x512xbf16>, vector<512x128xbf16>, vector<256x128xf32> -> vector<256x128xf32>
    %7 = arith.addf %3, %6 : vector<256x128xf32>
    %c0_6 = arith.constant 0 : index
    %c0_7 = arith.constant 0 : index
    %8 = vector.load %arg9[%c0_6, %c0_7] : memref<256x128xf32, #tpu.memory_space<vmem>>, vector<256x128xf32>
    tpu.vector_store %arg9[%c0_6, %c0_7], %7 {strides = array<i32>} : memref<256x128xf32, #tpu.memory_space<vmem>>, vector<256x128xf32>,
    %c1_i32 = arith.constant 1 : i32
    %9 = arith.cmpi eq, %arg1, %c1_i32 : i32
    %10 = arith.extui %9 : i1 to i32
    %c0_i32_8 = arith.constant 0 : i32
    %11 = arith.cmpi ne, %10, %c0_i32_8 : i32
    scf.if %11 {
      %c0_9 = arith.constant 0 : index
      %c0_10 = arith.constant 0 : index
      %12 = vector.load %arg9[%c0_9, %c0_10] : memref<256x128xf32, #tpu.memory_space<vmem>>, vector<256x128xf32>
      %13 = arith.truncf %12 : vector<256x128xf32> to vector<256x128xbf16>
      %c0_11 = arith.constant 0 : index
      %c0_12 = arith.constant 0 : index
      %14 = vector.load %arg5[%c0_11, %c0_12] : memref<128x256xbf16, #tpu.memory_space<vmem>>, vector<128x256xbf16>
      %cst_13 = arith.constant dense<0.000000e+00> : vector<256x256xf32>
      %15 = tpu.matmul %13, %14, %cst_13 {dimension_numbers = #tpu.dot_dimension_numbers<[1], [0], [0], [1], [0, 0, 1, 1], [], []>} : vector<256x128xbf16>, vector<128x256xbf16>, vector<256x256xf32> -> vector<256x256xf32>
      %c0_14 = arith.constant 0 : index
      %c0_15 = arith.constant 0 : index
      %16 = vector.load %arg4[%c0_14, %c0_15] : memref<256x128xbf16, #tpu.memory_space<vmem>>, vector<256x128xbf16>
      %c0_16 = arith.constant 0 : index
      %c0_17 = arith.constant 0 : index
      %17 = vector.load %arg6[%c0_16, %c0_17] : memref<128x256xbf16, #tpu.memory_space<vmem>>, vector<128x256xbf16>
      %cst_18 = arith.constant dense<0.000000e+00> : vector<256x256xf32>
      %18 = tpu.matmul %16, %17, %cst_18 {dimension_numbers = #tpu.dot_dimension_numbers<[1], [0], [0], [1], [0, 0, 1, 1], [], []>} : vector<256x128xbf16>, vector<128x256xbf16>, vector<256x256xf32> -> vector<256x256xf32>
      %19 = arith.addf %15, %18 : vector<256x256xf32>
      %c0_19 = arith.constant 0 : index
      %c0_20 = arith.constant 0 : index
      %20 = vector.load %arg7[%c0_19, %c0_20] : memref<1x256xf32, #tpu.memory_space<vmem>>, vector<1x256xf32>
      %21 = vector.broadcast %20 : vector<1x256xf32> to vector<256x256xf32>
      %22 = arith.addf %19, %21 : vector<256x256xf32>
      %cst_21 = arith.constant 0.000000e+00 : f32
      %23 = vector.broadcast %cst_21 : f32 to vector<256x256xf32>
      %24 = arith.maximumf %22, %23 : vector<256x256xf32>
      %c0_22 = arith.constant 0 : index
      %c0_23 = arith.constant 0 : index
      %25 = vector.load %arg8[%c0_22, %c0_23] : memref<256x256xf32, #tpu.memory_space<vmem>>, vector<256x256xf32>
      tpu.vector_store %arg8[%c0_22, %c0_23], %24 {strides = array<i32>} : memref<256x256xf32, #tpu.memory_space<vmem>>, vector<256x256xf32>,
    } else {
    }
    return
  }
  func.func @transform_0(%arg0: i32, %arg1: i32) -> (i32, i32) {
    %c0_i32 = arith.constant 0 : i32
    return %arg0, %arg1 : i32, i32
  }
  func.func @transform_1(%arg0: i32, %arg1: i32) -> (i32, i32) {
    %c0_i32 = arith.constant 0 : i32
    %c0_i32_0 = arith.constant 0 : i32
    return %arg1, %c0_i32 : i32, i32
  }
  func.func @transform_2(%arg0: i32, %arg1: i32) -> (i32, i32) {
    %c0_i32 = arith.constant 0 : i32
    %c0_i32_0 = arith.constant 0 : i32
    return %arg0, %c0_i32 : i32, i32
  }
  func.func @transform_3(%arg0: i32, %arg1: i32) -> (i32, i32) {
    %c0_i32 = arith.constant 0 : i32
    %c0_i32_0 = arith.constant 0 : i32
    %c0_i32_1 = arith.constant 0 : i32
    return %c0_i32, %c0_i32_0 : i32, i32
  }
  func.func @transform_4(%arg0: i32, %arg1: i32) -> (i32, i32) {
    %c0_i32 = arith.constant 0 : i32
    %c0_i32_0 = arith.constant 0 : i32
    %c0_i32_1 = arith.constant 0 : i32
    return %c0_i32, %c0_i32_0 : i32, i32
  }
  func.func @transform_5(%arg0: i32, %arg1: i32) -> (i32, i32) {
    %c0_i32 = arith.constant 0 : i32
    %c0_i32_0 = arith.constant 0 : i32
    %c0_i32_1 = arith.constant 0 : i32
    return %c0_i32, %c0_i32_0 : i32, i32
  }
  func.func @transform_6(%arg0: i32, %arg1: i32) -> (i32, i32) {
    %c0_i32 = arith.constant 0 : i32
    %c0_i32_0 = arith.constant 0 : i32
    return %arg0, %c0_i32 : i32, i32
  }
}

</mosaic_0001>

<bundles_post_ra>
// kernel: tpu_custom_call.1
= control target key start
LH: loop header
LB: loop body
LE: loop exit
PB: predicated region body
PF: predicated region fallthrough
CT: control target
= control target key end

     0   :  { %s4674_s0 = inlined_call_operand.hbm [shape: bf16[1024,1024], index: 0, kind: input, shape index: {}]   ;;  %s4675_s1 = inlined_call_operand.hbm [shape: bf16[1024,128], index: 1, kind: input, shape index: {}]   ;;  %s4676_s2 = inlined_call_operand.hbm [shape: bf16[1024,128], index: 2, kind: input, shape index: {}]   ;;  %s4677_s3 = inlined_call_operand.hbm [shape: bf16[128,256], index: 3, kind: input, shape index: {}]   ;;  %s4678_s4 = inlined_call_operand.hbm [shape: bf16[128,256], index: 4, kind: input, shape index: {}]   ;;  %s4679_s5 = inlined_call_operand.hbm [shape: f32[1,256], index: 5, kind: input, shape index: {}]   ;;  %s4680_s6 = inlined_call_operand.hbm [shape: f32[1024,256], index: 6, kind: output, shape index: {}]  }
   0x1   :  { %4702 = sst [smem:[#allocation31_spill]] %s4675_s1 }
   0x2   :  { %4703 = sst [smem:[#allocation32_spill]] %s4676_s2 }
   0x3   :  { %4704 = sst [smem:[#allocation33_spill]] %s4677_s3 }
   0x4   :  { %4705 = sst [smem:[#allocation34_spill]] %s4680_s6 }
   0x5   :  { %11 = vsyncpa [#allocation4], 0 }
   0x6   :  { %13 = vsyncpa [#allocation4 + $0x1], 0 }
   0x7   :  { %14 = vsyncpa [#allocation7], 0 }
   0x8   :  { %16 = vsyncpa [#allocation7 + $0x1], 0 }
   0x9   :  { %17 = vsyncpa [#allocation10], 0 }
   0xa   :  { %18 = vsyncpa [#allocation13], 0 }
   0xb   :  { %19 = vsyncpa [#allocation5], 0 }
   0xc   :  { %21 = vsyncpa [#allocation5 + $0x1], 0  ;;  %s3874_s21 = smov 0   ;;  %s3876_s22 = smov 0  }
   0xd   :  { %s3878_s23 = smov 0   ;;  %s3880_s24 = smov 0  }
   0xe   :  { %s3882_s25 = smov 0   ;;  %s3884_s26 = smov 0  }
   0xf   :  { %s3886_s27 = smov 0   ;;  %s3888_s28 = smov 0  }
  0x10   :  { %s3890_s29 = smov 0   ;;  %s3892_s30 = smov 0  }
  0x11   :  { %s3894_s7 = smov 0   ;;  %s3896_s8 = smov 0  }
  0x12   :  { %s3898_s9 = smov 0   ;;  %s3900_s10 = smov 0  }
  0x13 LB: > { %4706 = sst [smem:[#allocation21_spill]] %s3767_s21  ;;  %s3945_s11 = sadd.s32 4294967295, %s3819_s10   ;;  %s3819_s10 = sphi %s3900_s10, %s27_s10   ;;  %s3815_s9 = sphi %s3898_s9, %s4782_s9   ;;  %s3811_s8 = sphi %s3896_s8, %s4781_s8   ;;  %s3807_s7 = sphi %s3894_s7, %s4780_s7   ;;  %s3803_s30 = sphi %s3892_s30, %s4779_s30   ;;  %s3799_s29 = sphi %s3890_s29, %s4778_s29   ;;  %s3795_s28 = sphi %s3888_s28, %s4777_s28   ;;  %s3791_s27 = sphi %s3886_s27, %s4776_s27   ;;  %s3787_s26 = sphi %s3884_s26, %s4770_s26   ;;  %s3783_s25 = sphi %s3882_s25, %s4769_s25   ;;  %s3779_s24 = sphi %s3880_s24, %s4768_s24   ;;  %s3775_s23 = sphi %s3878_s23, %s4775_s23   ;;  %s3771_s22 = sphi %s3876_s22, %s4774_s22   ;;  %s3767_s21 = sphi %s3874_s21, %s4773_s21  }
  0x14   : > { %4707 = sst [smem:[#allocation22_spill]] %s3783_s25  ;;  %p2644_p0 = scmp.ge.s32.totalorder %s3819_s10, 1 }
  0x15   : > { %4708 = sst [smem:[#allocation23_spill]] %s3787_s26  ;;  %p4682_p1 = scmp.eq.s32.totalorder %s3945_s11, 0 }
  0x16   : > { %4709 = sst [smem:[#allocation24_spill]] %s3803_s30  ;;  %p213_p3 = scmp.lt.s32.totalorder %s3819_s10, 9 }
  0x17   : > { %4710 = sst [smem:[#allocation25_spill]] %s3807_s7  ;;  %s3821_s13 = smov [#allocation9]  }
  0x18   : > { %p3951_p4 = pnand %p2644_p0, %p213_p3  ;;  %s225_s14 = sshll.u32 %s3821_s13, 4  ;;  %s226_s14 = int_to_ptr.vmem [resolvable:$true] %s225_s14 }
  0x19   : > { %s4714_s3 = sld [smem:[#allocation33_spill]] }
  0x1a   : > { %s4711_s12 = scalar_select %p3951_p4, 1, 0 }
  0x1b   : > { %p3133_p5 = pneg %p3951_p4 }
  0x1c   : > { %4712 = sst [smem:[#allocation26_spill]] %s4711_s12 }
  0x1d   : > { %p3959_p6 = pnand %p3133_p5, %p4682_p1 }
  0x1f   : > { %s4713_s15 = scalar_select %p3959_p6, 1, 0 }
  0x20   : > { %s3483_s18 = scalar_lea.hbm %s4714_s3, 2048  ;;  %p3971_p8 = pneg %p3959_p6 }
  0x21   : > { %p3484_p7 = scmp.ne.s32.totalorder %s4714_s3, %s3483_s18  ;;  %p3490_p11 = scmp.lt.u32.totalorder %s3483_s18, %s4714_s3 }
  0x23   : > { %p3486_p9 = pnand %p3971_p8, %p3484_p7 }
  0x25   : > { %p3487_p10 = pneg %p3486_p9 }
  0x27   : > { %p3492_p12 = pnand %p3490_p11, %p3487_p10 }
  0x29   : > { %3495 = shalt.err (!%p3492_p12)
}
  0x2a   : > { %s3496_s16 = scalar_lea.vmem %s226_s14, 2048  ;;  %p3504_p5 = scmp.lt.s32.totalorder %s226_s14, %s226_s14 }
  0x2b   : > { %p3497_p13 = scmp.ne.s32.totalorder %s226_s14, %s3496_s16  ;;  %p3505_p2 = scmp.lt.s32.totalorder %s3496_s16, %s3496_s16 }
  0x2d   : > { %p3499_p0 = pnand %p3497_p13, %p3971_p8  ;;  %p3506_p1 = por %p3505_p2, %p3504_p5 }
  0x2f   : > { %p3500_p3 = pneg %p3499_p0 }
  0x31   : > { %p3507_p4 = pnand %p3506_p1, %p3500_p3 }
  0x33   : > { %3510 = shalt.err (!%p3507_p4)
}
  0x34   : > { %s4684_s17 = smov 128   ;;  %s4685_s6 = smov 8  }
  0x35   : > { %3136 = dma.hbm_to_vmem [thread:$0]  (!%p3959_p6), %s4714_s3, 2048, %s226_s14, [#allocation10], %s4684_s17, %s4684_s17, %s4685_s6  }
  0x36   : > { %s36_s19 = sadd.s32 1, %s3811_s8  ;;  %s39_s20 = sadd.s32 1, %s3815_s9 }
  0x37   : > { %p37_p1 = scmp.ge.s32.totalorder %s36_s19, 2  ;;  %p4693_p2 = scmp.eq.s32.totalorder %s3819_s10, 0 }
  0x38   : > { %s74_s16 = sadd.s32 1, %s3787_s26  ;;  %p81_p4 = scmp.ne.s32.totalorder %s3787_s26, %s3783_s25 }
  0x39   : > { %s4784_s19 = smov (%p37_p1, %s36_s19), 0  ;;  %s4786_s20 = smov (!%p37_p1, %s39_s20), %s3815_s9 }
  0x3a   : > { %4716 = sst [smem:[#allocation27_spill]] %s4784_s19  ;;  %s44_s30 = ssub.s32 %s3811_s8, %s4784_s19 }
  0x3b   : > { %p4003_p7 = por %p81_p4, %p4693_p2  ;;  %p41_p9 = scmp.ge.s32.totalorder %s4786_s20, 4 }
  0x3c   : > { %p72_p10 = scmp.eq.s32.totalorder %s44_s30, 0  ;;  %p87_p11 = scmp.ne.s32.totalorder %s3783_s25, %s3779_s24 }
  0x3d   : > { %p4692_p12 = scmp.lt.s32.totalorder %s3819_s10, 8  ;;  %s4788_s20 = smov (%p41_p9, %s4786_s20), 0 }
  0x3e   : > { %4718 = sst [smem:[#allocation28_spill]] %s4788_s20  ;;  %s4017_s18 = ssub.s32 %s3815_s9, %s4788_s20 }
  0x3f   : > { %s4013_s7 = scalar_select %p72_p10, %s3787_s26, %s74_s16  }
  0x40   : > { %p4720_p13 = scmp.eq.s32.totalorder %s3945_s11, 0  ;;  %s45_s6 = sor.u32 %s44_s30, %s4017_s18 }
  0x41   : > { %4719 = sst [smem:[#allocation29_spill]] %s4013_s7  ;;  %p4027_p5 = scmp.eq.s32.totalorder %s45_s6, 0 }
  0x42   : > { %p4021_p0 = por %p87_p11, %p4720_p13  ;;  %s287_s3 = sand.u32 1, %s3819_s10  }
  0x43   : > { %s4723_s24 = scalar_select %p4027_p5, 1, 0 }
  0x44   : > { %s4721_s17 = scalar_select %p4021_p0, 1, 0 }
  0x45   : > { %s289_s19 = sand.u32 1, %s3787_s26   ;;  %s2821_s16 = sshll.u32 %s3811_s8, 12 }
  0x46   : > { %4722 = sst [smem:[#allocation30_spill]] %s4721_s17  ;;  %s2654_s25 = sshll.u32 %s289_s19, 8 }
  0x47   : > { %s4724_s1 = sld [smem:[#allocation31_spill]]  ;;  %s291_s17 = scalar_lea.vmem [#allocation6], %s2654_s25 }
  0x48   : > { %s298_s30 = sshll.u32 %s291_s17, 4  ;;  %p4043_p1 = pnand %p4692_p12, %p4003_p7  ;;  %s4047_s30 = int_to_ptr.vmem [resolvable:$true] %s298_s30 }
  0x49   : > { %s4049_s19 = scalar_lea.sflag [#allocation7], %s287_s3 }
  0x4a   : > { %p3513_p9 = pneg %p4043_p1 }
  0x4d   : > { %s4037_s12 = scalar_lea.hbm %s4724_s1, %s2821_s16  ;;  %s3516_s14 = scalar_lea.hbm %s4724_s1, 8192 }
  0x4e   : > { %s3511_s20 = scalar_lea.hbm %s4037_s12, 4096  ;;  %p3517_p7 = scmp.lt.u32.totalorder %s4037_s12, %s4724_s1 }
  0x4f   : > { %p3512_p4 = scmp.ne.s32.totalorder %s4037_s12, %s3511_s20  ;;  %p3518_p13 = scmp.lt.u32.totalorder %s3516_s14, %s3511_s20 }
  0x50   : > { %p3520_p12 = scmp.lt.u32.totalorder %s3511_s20, %s4037_s12 }
  0x51   : > { %p3514_p10 = pnand %p3513_p9, %p3512_p4  ;;  %p3519_p3 = por %p3518_p13, %p3517_p7 }
  0x53   : > { %p3515_p11 = pneg %p3514_p10  ;;  %p3521_p2 = por %p3520_p12, %p3519_p3 }
  0x55   : > { %p3522_p0 = pnand %p3521_p2, %p3515_p11 }
  0x57   : > { %3525 = shalt.err (!%p3522_p0)
}
  0x58   : > { %s3526_s3 = scalar_lea.vmem %s4047_s30, 4096  ;;  %s3824_s25 = smov [#allocation6]  }
  0x59   : > { %p3527_p4 = scmp.ne.s32.totalorder %s4047_s30, %s3526_s3  ;;  %s3531_s17 = sshll.u32 %s3824_s25, 4  ;;  %s3532_s17 = int_to_ptr.vmem [resolvable:$false] %s3531_s17 }
  0x5a   : > { %s3533_s7 = scalar_lea.vmem %s3532_s17, 8192  ;;  %p3534_p6 = scmp.lt.s32.totalorder %s4047_s30, %s3532_s17 }
  0x5b   : > { %p3529_p10 = pnand %p3527_p4, %p3513_p9  ;;  %p3535_p7 = scmp.lt.s32.totalorder %s3533_s7, %s3526_s3 }
  0x5d   : > { %p3530_p5 = pneg %p3529_p10  ;;  %p3536_p13 = por %p3535_p7, %p3534_p6 }
  0x5f   : > { %p3537_p12 = pnand %p3536_p13, %p3530_p5 }
  0x61   : > { %3540 = shalt.err (!%p3537_p12)
}
  0x62   : > { %s4699_s20 = smov 64   ;;  %s3826_s14 = smov 4  }
  0x63   : > { %3149 = dma.hbm_to_vmem [thread:$0]  (!%p4043_p1), %s4037_s12, 4096, %s4047_s30, %s4049_s19, %s4699_s20, %s4699_s20, %s3826_s14  }
  0x64   : > { %s3827_s16 = smov [#allocation11]   ;;  %s3828_s1 = smov [#allocation12]  }
  0x65   : > { %s238_s25 = sshll.u32 %s3827_s16, 4  ;;  %s252_s17 = sshll.u32 %s3828_s1, 4  ;;  %s239_s25 = int_to_ptr.vmem [resolvable:$true] %s238_s25  ;;  %s4080_s17 = int_to_ptr.vmem [resolvable:$true] %s252_s17 }
  0x66   : > { %s3541_s26 = scalar_lea.hbm %s4678_s4, 2048 }
  0x67   : > { %p3542_p6 = scmp.ne.s32.totalorder %s4678_s4, %s3541_s26  ;;  %p3548_p3 = scmp.lt.u32.totalorder %s3541_s26, %s4678_s4 }
  0x69   : > { %p3544_p2 = pnand %p3542_p6, %p3971_p8 }
  0x6b   : > { %p3545_p0 = pneg %p3544_p2 }
  0x6d   : > { %p3550_p5 = pnand %p3548_p3, %p3545_p0 }
  0x6f   : > { %3553 = shalt.err (!%p3550_p5)
}
  0x70   : > { %s3554_s1 = scalar_lea.vmem %s239_s25, 2048  ;;  %p3562_p4 = scmp.lt.s32.totalorder %s239_s25, %s239_s25 }
  0x71   : > { %p3555_p1 = scmp.ne.s32.totalorder %s239_s25, %s3554_s1  ;;  %p3563_p10 = scmp.lt.s32.totalorder %s3554_s1, %s3554_s1 }
  0x73   : > { %p3557_p9 = pnand %p3555_p1, %p3971_p8  ;;  %p3564_p7 = por %p3563_p10, %p3562_p4 }
  0x75   : > { %p3558_p11 = pneg %p3557_p9 }
  0x77   : > { %p3565_p13 = pnand %p3564_p7, %p3558_p11 }
  0x79   : > { %3568 = shalt.err (!%p3565_p13)
}
  0x7a   : > { %p4726_p12 = scmp.ne.s32.totalorder %s4713_s15, 0  ;;  %s4727_s2 = smov 8  }
  0x7b   : > { %s4728_s21 = smov 128   ;;  %s3569_s7 = scalar_lea.hbm %s4679_s5, 32 }
  0x7c   : > { %3139 = dma.hbm_to_vmem [thread:$0]  (!%p4726_p12), %s4678_s4, 2048, %s239_s25, [#allocation10], %s4728_s21, %s4728_s21, %s4727_s2  }
  0x7d   : > { %p3570_p6 = scmp.ne.s32.totalorder %s4679_s5, %s3569_s7  ;;  %p3576_p3 = scmp.lt.u32.totalorder %s3569_s7, %s4679_s5 }
  0x7f   : > { %p3572_p2 = pnand %p3570_p6, %p3971_p8 }
  0x81   : > { %p3573_p0 = pneg %p3572_p2 }
  0x83   : > { %p3578_p5 = pnand %p3576_p3, %p3573_p0 }
  0x85   : > { %3581 = shalt.err (!%p3578_p5)
}
  0x86   : > { %s3582_s25 = scalar_lea.vmem %s4080_s17, 32  ;;  %p3590_p4 = scmp.lt.s32.totalorder %s4080_s17, %s4080_s17 }
  0x87   : > { %p3583_p1 = scmp.ne.s32.totalorder %s4080_s17, %s3582_s25  ;;  %p3591_p10 = scmp.lt.s32.totalorder %s3582_s25, %s3582_s25 }
  0x89   : > { %p3585_p9 = pnand %p3583_p1, %p3971_p8  ;;  %p3592_p7 = por %p3591_p10, %p3590_p4 }
  0x8b   : > { %p3586_p11 = pneg %p3585_p9 }
  0x8d   : > { %p3593_p13 = pnand %p3592_p7, %p3586_p11 }
  0x8f   : > { %3596 = shalt.err (!%p3593_p13)
}
  0x90   : > { %3142 = dma.hbm_to_vmem [thread:$0]  (!%p4726_p12), %s4679_s5, 32, %s4080_s17, [#allocation13]  }
  0x91   : > { %s48_s13 = sadd.s32 1, %s3799_s29  ;;  %p55_p8 = scmp.ne.s32.totalorder %s3799_s29, %s3795_s28 }
  0x92   : > { %p4729_p6 = scmp.ne.s32.totalorder %s4723_s24, 0  ;;  %p4730_p2 = scmp.eq.s32.totalorder %s3819_s10, 0 }
  0x93   : > { %p61_p3 = scmp.ne.s32.totalorder %s3795_s28, %s3791_s27  ;;  %s263_s30 = sand.u32 1, %s3799_s29  }
  0x94   : > { %s4132_s15 = scalar_select %p4729_p6, %s3799_s29, %s48_s13  }
  0x95   : > { %p4136_p0 = por %p4730_p2, %p55_p8  ;;  %s2651_s26 = sshll.u32 %s3811_s8, 2 }
  0x96   : > { %p4732_p5 = scmp.eq.s32.totalorder %s3945_s11, 0  ;;  %s2649_s17 = sshll.u32 %s263_s30, 9 }
  0x97   : > { %s2820_s3 = sshll.u32 %s3815_s9, 8  ;;  %s267_s6 = scalar_lea.vmem [#allocation3], %s2649_s17 }
  0x98   : > { %p4146_p1 = por %p4732_p5, %p61_p3  ;;  %s274_s7 = sadd.s32 %s2820_s3, %s2651_s26 }
  0x99   : > { %s2653_s24 = sshll.u32 %s274_s7, 6  ;;  %s277_s12 = sshll.u32 %s267_s6, 4  ;;  %s4156_s12 = int_to_ptr.vmem [resolvable:$true] %s277_s12 }
  0x9a   : > { %s4154_s20 = scalar_lea.hbm %s4674_s0, %s2653_s24  ;;  %p4734_p12 = scmp.lt.s32.totalorder %s3819_s10, 8 }
  0x9b   : > { %s4166_s2 = scalar_lea.sflag [#allocation4], %s263_s30  ;;  %s3597_s13 = scalar_lea.hbm %s4154_s20, 8192 }
  0x9c   : > { %p4162_p9 = pnand %p4734_p12, %p4136_p0  ;;  %p3598_p11 = scmp.ne.s32.totalorder %s4154_s20, %s3597_s13 }
  0x9d   : > { %s3602_s21 = scalar_lea.hbm %s4674_s0, 65536  ;;  %p3603_p13 = scmp.lt.u32.totalorder %s4154_s20, %s4674_s0 }
  0x9e   : > { %p3599_p4 = pneg %p4162_p9  ;;  %p3604_p8 = scmp.lt.u32.totalorder %s3602_s21, %s3597_s13 }
  0x9f   : > { %p3606_p2 = scmp.lt.u32.totalorder %s3597_s13, %s4154_s20 }
  0xa0   : > { %p3600_p10 = pnand %p3599_p4, %p3598_p11  ;;  %p3605_p6 = por %p3604_p8, %p3603_p13 }
  0xa2   : > { %p3601_p7 = pneg %p3600_p10  ;;  %p3607_p0 = por %p3606_p2, %p3605_p6 }
  0xa4   : > { %p3608_p3 = pnand %p3607_p0, %p3601_p7 }
  0xa6   : > { %3611 = shalt.err (!%p3608_p3)
}
  0xa7   : > { %s3612_s30 = scalar_lea.vmem %s4156_s12, 8192  ;;  %s3829_s24 = smov [#allocation3]  }
  0xa8   : > { %p3613_p5 = scmp.ne.s32.totalorder %s4156_s12, %s3612_s30  ;;  %s3617_s6 = sshll.u32 %s3829_s24, 4  ;;  %s3618_s6 = int_to_ptr.vmem [resolvable:$false] %s3617_s6 }
  0xa9   : > { %s3619_s1 = scalar_lea.vmem %s3618_s6, 16384  ;;  %p3620_p10 = scmp.lt.s32.totalorder %s4156_s12, %s3618_s6 }
  0xaa   : > { %p3615_p12 = pnand %p3613_p5, %p3599_p4  ;;  %p3621_p13 = scmp.lt.s32.totalorder %s3619_s1, %s3612_s30 }
  0xac   : > { %p3616_p11 = pneg %p3615_p12  ;;  %p3622_p8 = por %p3621_p13, %p3620_p10 }
  0xae   : > { %p3623_p6 = pnand %p3622_p8, %p3616_p11 }
  0xb0   : > { %3626 = shalt.err (!%p3623_p6)
}
  0xb1   : > { %s3830_s25 = smov 512   ;;  %s4736_s13 = sld [smem:[#allocation21_spill]] }
  0xb2   : > { %s3831_s26 = smov 256   ;;  %s3832_s17 = smov 16  }
  0xb3   : > { %3146 = dma.hbm_to_vmem [thread:$0]  (!%p4162_p9), %s4154_s20, 8192, %s4156_s12, %s4166_s2, %s3830_s25, %s3831_s26, %s3832_s17  }
  0xb4   : > { %s2643_s21 = sadd.s32 4294967294, %s3819_s10   ;;  %s100_s3 = sadd.s32 1, %s3775_s23 }
  0xb5   : > { %p107_p4 = scmp.ne.s32.totalorder %s3775_s23, %s3771_s22  ;;  %p4737_p7 = scmp.eq.s32.totalorder %s4017_s18, 0 }
  0xb6   : > { %p4738_p2 = scmp.eq.s32.totalorder %s3819_s10, 0  ;;  %p4740_p5 = scmp.eq.s32.totalorder %s3945_s11, 7 }
  0xb7   : > { %s4201_s7 = scalar_select %p4737_p7, %s3775_s23, %s100_s3  }
  0xb8   : > { %p4205_p0 = por %p107_p4, %p4738_p2  ;;  %p113_p3 = scmp.ne.s32.totalorder %s3771_s22, %s4736_s13 }
  0xb9   : > { %p4213_p12 = por %p4740_p5, %p107_p4  ;;  %p206_p9 = scmp.eq.s32.totalorder %s2643_s21, 7 }
  0xba   : > { %p4742_p11 = scmp.eq.s32.totalorder %s3945_s11, 0  ;;  %s310_s18 = sand.u32 1, %s3775_s23  }
  0xbb   : > { %s4741_s24 = scalar_select %p4213_p12, 1, 0 }
  0xbc   : > { %p4219_p10 = por %p113_p3, %p4742_p11  ;;  %p4224_p13 = por %p206_p9, %p113_p3 }
  0xbd   : > { %s2657_s27 = sshll.u32 %s310_s18, 7  ;;  %s2822_s2 = sshll.u32 %s3815_s9, 11 }
  0xbe   : > { %s4743_s12 = scalar_select %p4219_p10, 1, 0 }
  0xbf   : > { %s4744_s20 = scalar_select %p4224_p13, 1, 0 }
  0xc0   : > { %s4745_s25 = sld [smem:[#allocation32_spill]]  ;;  %s312_s17 = scalar_lea.vmem [#allocation8], %s2657_s27 }
  0xc1   : > { %s319_s21 = sshll.u32 %s312_s17, 4  ;;  %p4747_p8 = scmp.lt.s32.totalorder %s3819_s10, 8  ;;  %s4234_s21 = int_to_ptr.vmem [resolvable:$true] %s319_s21 }
  0xc3   : > { %p4240_p6 = pnand %p4747_p8, %p4205_p0 }
  0xc5   : > { %p3629_p7 = pneg %p4240_p6 }
  0xc6   : > { %s4746_s13 = smov %s4745_s25  ;;  %s4232_s26 = scalar_lea.hbm %s4745_s25, %s2822_s2 }
  0xc7   : > { %s3627_s18 = scalar_lea.hbm %s4232_s26, 2048  ;;  %s3632_s6 = scalar_lea.hbm %s4746_s13, 8192 }
  0xc8   : > { %p3628_p4 = scmp.ne.s32.totalorder %s4232_s26, %s3627_s18  ;;  %p3633_p0 = scmp.lt.u32.totalorder %s4232_s26, %s4746_s13 }
  0xc9   : > { %p3634_p5 = scmp.lt.u32.totalorder %s3632_s6, %s3627_s18  ;;  %p3636_p11 = scmp.lt.u32.totalorder %s3627_s18, %s4232_s26 }
  0xca   : > { %p3630_p2 = pnand %p3629_p7, %p3628_p4 }
  0xcb   : > { %p3635_p9 = por %p3634_p5, %p3633_p0 }
  0xcc   : > { %p3631_p3 = pneg %p3630_p2 }
  0xcd   : > { %p3637_p8 = por %p3636_p11, %p3635_p9 }
  0xcf   : > { %p3638_p13 = pnand %p3637_p8, %p3631_p3 }
  0xd1   : > { %3641 = shalt.err (!%p3638_p13)
}
  0xd2   : > { %s3642_s25 = scalar_lea.vmem %s4234_s21, 2048  ;;  %s3833_s17 = smov [#allocation8]  }
  0xd3   : > { %p3643_p4 = scmp.ne.s32.totalorder %s4234_s21, %s3642_s25  ;;  %s3647_s27 = sshll.u32 %s3833_s17, 4  ;;  %s3648_s27 = int_to_ptr.vmem [resolvable:$false] %s3647_s27 }
  0xd4   : > { %s3649_s2 = scalar_lea.vmem %s3648_s27, 4096  ;;  %p3650_p10 = scmp.lt.s32.totalorder %s4234_s21, %s3648_s27 }
  0xd5   : > { %p3645_p2 = pnand %p3643_p4, %p3629_p7  ;;  %p3651_p0 = scmp.lt.s32.totalorder %s3649_s2, %s3642_s25 }
  0xd7   : > { %p3646_p12 = pneg %p3645_p2  ;;  %p3652_p5 = por %p3651_p0, %p3650_p10 }
  0xd9   : > { %p3653_p9 = pnand %p3652_p5, %p3646_p12 }
  0xdb   : > { %3656 = shalt.err (!%p3653_p9)
}
  0xdc   : > { %s4749_s18 = smov 64   ;;  %s4750_s6 = sld [smem:[#allocation26_spill]] }
  0xdd   : > { %3152 = dma.hbm_to_vmem [thread:$0]  (!%p4240_p6), %s4232_s26, 2048, %s4234_s21, %s4049_s19, %s4749_s18, %s4749_s18, %s3826_s14  }
  0xe2   : > { %p4751_p13 = scmp.ne.s32.totalorder %s4750_s6, 0 }
  0xe3   : > { %s333_s30 = sand.u32 (!%p4751_p13), 1, %s3795_s28  }
  0xe4   : > { %331 = sbr.rel (%p4751_p13) target bundleno = 1033 (0x409), region = 44  ;;  %s2661_s1 = sshll.u32 (!%p4751_p13), %s333_s30, 9 }
  0xe5   : > { %s334_s25 = scalar_lea.sflag (!%p4751_p13), [#allocation4], %s333_s30  ;;  %s4276_s17 = scalar_lea.vmem (!%p4751_p13), [#allocation3], %s2661_s1 }
  0xeb   : > { %3742 = dma.done.wait (%p4146_p1), %s334_s25, 8192  }
  0xec   : > { %3744 = vsyncadd (%p4146_p1), %s334_s25, 4294959104  ;;  %s4752_s3 = sld [smem:[#allocation22_spill]]  ;;  %s4753_s27 = sld [smem:[#allocation30_spill]] }
  0xed   : > { %s342_s2 = sand.u32 1, %s3945_s11  }
  0xee   : > { %s343_s26 = scalar_lea.sflag [#allocation7], %s342_s2 }
  0xf2   : > { %s344_s19 = sand.u32 1, %s4752_s3   ;;  %p4754_p12 = scmp.ne.s32.totalorder %s4753_s27, 0 }
  0xf3   : > { %s2662_s14 = sshll.u32 %s344_s19, 8 }
  0xf4   : > { %s4284_s21 = scalar_lea.vmem [#allocation6], %s2662_s14 }
  0xf5   : > { %3746 = dma.done.wait (%p4754_p12), %s343_s26, 4096  }
  0xf6   : > { %3748 = vsyncadd (%p4754_p12), %s343_s26, 4294963200  ;;  %s4291_s18 = sand.u32 1, %s3771_s22   ;;  %p4755_p1 = scmp.ne.s32.totalorder %s4743_s12, 0 }
  0xf7   : > { %s2663_s16 = sshll.u32 %s4291_s18, 7 }
  0xf8   : > { %s4294_s6 = scalar_lea.vmem [#allocation8], %s2663_s16 }
  0xf9   : > { %3750 = dma.done.wait (%p4755_p1), %s343_s26, 2048  }
  0xfa   : > { %3752 = vsyncadd (%p4755_p1), %s343_s26, 4294965248  ;;  %p4756_p10 = scmp.eq.s32.totalorder %s3945_s11, 0 }
  0xfc   : > { %3754 = dma.done.wait (%p4756_p10), [#allocation10], 4096   ;;  %p4757_p6 = pmov %p4756_p10 }
  0xfe   : > { %3756 = vsyncadd (%p4757_p6), [#allocation10], 4294963200  ;;  %p4758_p7 = pmov %p4757_p6 }
  0xff   : > { %p4759_p3 = pmov %p4757_p6 }
 0x100   : > { %3758 = dma.done.wait (%p4758_p7), [#allocation13], 32  }
 0x101   : > { %3760 = vsyncadd (%p4759_p3), [#allocation13], 4294967264  ;;  %s2667_s30 = sshll.u32 %s4291_s18, 9  ;;  %s4760_s25 = sld [smem:[#allocation24_spill]] }
 0x102   : > { %s4309_s1 = scalar_lea.vmem [#allocation14], %s2667_s30 }
 0x107   : > { %p2668_p11 = scmp.ne.s32.totalorder %s4760_s25, 0 }
 0x108   : > { %v3834_v0 = vmov (!%p2668_p11), 0.0  }
 0x109   : > { %415 = sbr.rel (%p2668_p11) target bundleno = 281 (0x119), region = 72  ;;  %416 = vst [vmem:[#allocation2] sm:$0xff] (!%p2668_p11), %v3834_v0  ;;  %417 = vst [vmem:[#allocation2 + $0x8] sm:$0xff] (!%p2668_p11), %v3834_v0 }
 0x10a   : > { %418 = vst [vmem:[#allocation2 + $0x10] sm:$0xff] (!%p2668_p11), %v3834_v0  ;;  %419 = vst [vmem:[#allocation2 + $0x18] sm:$0xff] (!%p2668_p11), %v3834_v0 }
 0x10b   : > { %420 = vst [vmem:[#allocation2 + $0x20] sm:$0xff] (!%p2668_p11), %v3834_v0  ;;  %421 = vst [vmem:[#allocation2 + $0x28] sm:$0xff] (!%p2668_p11), %v3834_v0 }
 0x10c   : > { %422 = vst [vmem:[#allocation2 + $0x30] sm:$0xff] (!%p2668_p11), %v3834_v0  ;;  %423 = vst [vmem:[#allocation2 + $0x38] sm:$0xff] (!%p2668_p11), %v3834_v0 }
 0x10d   : > { %424 = vst [vmem:[#allocation2 + $0x40] sm:$0xff] (!%p2668_p11), %v3834_v0  ;;  %425 = vst [vmem:[#allocation2 + $0x48] sm:$0xff] (!%p2668_p11), %v3834_v0 }
 0x10e   : > { %426 = vst [vmem:[#allocation2 + $0x50] sm:$0xff] (!%p2668_p11), %v3834_v0  ;;  %427 = vst [vmem:[#allocation2 + $0x58] sm:$0xff] (!%p2668_p11), %v3834_v0 }
 0x10f   : > { %428 = vst [vmem:[#allocation2 + $0x60] sm:$0xff] (!%p2668_p11), %v3834_v0  ;;  %429 = vst [vmem:[#allocation2 + $0x68] sm:$0xff] (!%p2668_p11), %v3834_v0 }
 0x110   : > { %430 = vst [vmem:[#allocation2 + $0x70] sm:$0xff] %v3834_v0  ;;  %431 = vst [vmem:[#allocation2 + $0x78] sm:$0xff] %v3834_v0 }
 0x111   : > { %432 = vst [vmem:[#allocation2 + $0x80] sm:$0xff] %v3834_v0  ;;  %433 = vst [vmem:[#allocation2 + $0x88] sm:$0xff] %v3834_v0 }
 0x112   : > { %434 = vst [vmem:[#allocation2 + $0x90] sm:$0xff] %v3834_v0  ;;  %435 = vst [vmem:[#allocation2 + $0x98] sm:$0xff] %v3834_v0 }
 0x113   : > { %436 = vst [vmem:[#allocation2 + $0xa0] sm:$0xff] %v3834_v0  ;;  %437 = vst [vmem:[#allocation2 + $0xa8] sm:$0xff] %v3834_v0 }
 0x114   : > { %438 = vst [vmem:[#allocation2 + $0xb0] sm:$0xff] %v3834_v0  ;;  %439 = vst [vmem:[#allocation2 + $0xb8] sm:$0xff] %v3834_v0 }
 0x115   : > { %440 = vst [vmem:[#allocation2 + $0xc0] sm:$0xff] %v3834_v0  ;;  %441 = vst [vmem:[#allocation2 + $0xc8] sm:$0xff] %v3834_v0 }
 0x116   : > { %442 = vst [vmem:[#allocation2 + $0xd0] sm:$0xff] %v3834_v0  ;;  %443 = vst [vmem:[#allocation2 + $0xd8] sm:$0xff] %v3834_v0 }
 0x117   : > { %444 = vst [vmem:[#allocation2 + $0xe0] sm:$0xff] %v3834_v0  ;;  %445 = vst [vmem:[#allocation2 + $0xe8] sm:$0xff] %v3834_v0 }
 0x118   : > { %446 = vst [vmem:[#allocation2 + $0xf0] sm:$0xff] %v3834_v0  ;;  %447 = vst [vmem:[#allocation2 + $0xf8] sm:$0xff] %v3834_v0 }
 0x119 PF: > { %v3291_v1 = vld [vmem:[%s4284_s21 + $0x40] sm:$0xff]   ;;  %v3295_v5 = vld [vmem:[%s4284_s21 + $0x48] sm:$0xff]   ;;  %v3299_v9 = vld [vmem:[%s4284_s21 + $0x50] sm:$0xff]   ;;  %s4761_s11 = sld [smem:[#allocation24_spill]] }
 0x11a   : > { %v3292_v2 = vld [vmem:[%s4284_s21 + $0xc0] sm:$0xff]   ;;  %2825 = vmatprep.subr.bf16.mxu0 %v3291_v1  ;;  %v3296_v6 = vld [vmem:[%s4284_s21 + $0xc8] sm:$0xff]   ;;  %v3300_v10 = vld [vmem:[%s4284_s21 + $0xd0] sm:$0xff]  }
 0x11b   : > { %v3293_v3 = vld [vmem:[%s4284_s21] sm:$0xff]   ;;  %2937 = vmatprep.subr.bf16.mxu1 %v3292_v2  ;;  %v3297_v7 = vld [vmem:[%s4284_s21 + $0x8] sm:$0xff]   ;;  %v3301_v11 = vld [vmem:[%s4284_s21 + $0x10] sm:$0xff]  }
 0x11c   : > { %v3294_v4 = vld [vmem:[%s4284_s21 + $0x80] sm:$0xff]   ;;  %2826 = vmatpush3.bf16.msra.mxu0 %v3293_v3  ;;  %v3298_v8 = vld [vmem:[%s4284_s21 + $0x88] sm:$0xff]   ;;  %v3302_v12 = vld [vmem:[%s4284_s21 + $0x90] sm:$0xff]  }
 0x11d   : > { %2938 = vmatpush3.bf16.msra.mxu1 %v3294_v4  ;;  %2827 = vmatprep.subr.bf16.mxu0 %v3295_v5  ;;  %v3303_v13 = vld [vmem:[%s4284_s21 + $0x58] sm:$0xff]   ;;  %v3307_v17 = vld [vmem:[%s4284_s21 + $0x60] sm:$0xff]   ;;  %v3311_v21 = vld [vmem:[%s4284_s21 + $0x68] sm:$0xff]  }
 0x11e   : > { %2939 = vmatprep.subr.bf16.mxu1 %v3296_v6  ;;  %v3304_v14 = vld [vmem:[%s4284_s21 + $0xd8] sm:$0xff]   ;;  %v3308_v18 = vld [vmem:[%s4284_s21 + $0xe0] sm:$0xff]   ;;  %v3312_v22 = vld [vmem:[%s4284_s21 + $0xe8] sm:$0xff]  }
 0x11f   : > { %v3305_v15 = vld [vmem:[%s4284_s21 + $0x18] sm:$0xff]   ;;  %v3309_v19 = vld [vmem:[%s4284_s21 + $0x20] sm:$0xff]   ;;  %v3313_v23 = vld [vmem:[%s4284_s21 + $0x28] sm:$0xff]   ;;  %p2765_p8 = scmp.ne.s32.totalorder %s4761_s11, 1 }
 0x120   : > { %2828 = vmatpush3.bf16.msra.mxu0 %v3297_v7  ;;  %v3306_v16 = vld [vmem:[%s4284_s21 + $0x98] sm:$0xff]   ;;  %v3310_v20 = vld [vmem:[%s4284_s21 + $0xa0] sm:$0xff]   ;;  %v3314_v24 = vld [vmem:[%s4284_s21 + $0xa8] sm:$0xff]  }
 0x121   : > { %2940 = vmatpush3.bf16.msra.mxu1 %v3298_v8  ;;  %2829 = vmatprep.subr.bf16.mxu0 %v3299_v9  ;;  %v3315_v25 = vld [vmem:[%s4284_s21 + $0x70] sm:$0xff]   ;;  %v3319_v29 = vld [vmem:[%s4284_s21 + $0x78] sm:$0xff]  }
 0x122   : > { %2941 = vmatprep.subr.bf16.mxu1 %v3300_v10  ;;  %v3316_v26 = vld [vmem:[%s4284_s21 + $0xf0] sm:$0xff]   ;;  %v3320_v30 = vld [vmem:[%s4284_s21 + $0xf8] sm:$0xff]  }
 0x123   : > { %v3317_v27 = vld [vmem:[%s4284_s21 + $0x30] sm:$0xff]   ;;  %v3321_v31 = vld [vmem:[%s4284_s21 + $0x38] sm:$0xff]  }
 0x124   : > { %2830 = vmatpush3.bf16.msra.mxu0 %v3301_v11  ;;  %v3318_v28 = vld [vmem:[%s4284_s21 + $0xb0] sm:$0xff]   ;;  %v3322_v32 = vld [vmem:[%s4284_s21 + $0xb8] sm:$0xff]  }
 0x125   : > { %2942 = vmatpush3.bf16.msra.mxu1 %v3302_v12  ;;  %2831 = vmatprep.subr.bf16.mxu0 %v3303_v13  ;;  %v3323_v33 = vld [vmem:[%s4276_s17] ss:$16 sps:$4 sm:$0xff]   ;;  %v3325_v34 = vld [vmem:[%s4276_s17 + $0x4] ss:$16 sps:$4 sm:$0xff]   ;;  %v3326_v35 = vld [vmem:[%s4276_s17 + $0x8] ss:$16 sps:$4 sm:$0xff]  }
 0x126   : > { %2943 = vmatprep.subr.bf16.mxu1 %v3304_v14  ;;  %v3328_v36 = vld [vmem:[%s4276_s17 + $0xc] ss:$16 sps:$4 sm:$0xff]   ;;  %1152 = vmatprep.mubr.bf16.mxu0 %v3325_v34  ;;  %v3329_v37 = vld [vmem:[%s4276_s17 + $0x24] ss:$16 sps:$4 sm:$0xff]   ;;  %v3333_v39 = vld [vmem:[%s4276_s17 + $0x20] ss:$16 sps:$4 sm:$0xff]  }
 0x127   : > { %1313 = vmatprep.mubr.bf16.mxu1 %v3328_v36  ;;  %v3331_v38 = vld [vmem:[%s4276_s17 + $0x2c] ss:$16 sps:$4 sm:$0xff]   ;;  %v3334_v40 = vld [vmem:[%s4276_s17 + $0x28] ss:$16 sps:$4 sm:$0xff]   ;;  %v3335_v41 = vld [vmem:[%s4276_s17 + $0x44] ss:$16 sps:$4 sm:$0xff]  }
 0x128   : > { %2832 = vmatpush3.bf16.msra.mxu0 %v3305_v15  ;;  %v3337_v42 = vld [vmem:[%s4276_s17 + $0x4c] ss:$16 sps:$4 sm:$0xff]   ;;  %v3339_v43 = vld [vmem:[%s4276_s17 + $0x40] ss:$16 sps:$4 sm:$0xff]   ;;  %v3340_v44 = vld [vmem:[%s4276_s17 + $0x48] ss:$16 sps:$4 sm:$0xff]  }
 0x129   : > { %2944 = vmatpush3.bf16.msra.mxu1 %v3306_v16  ;;  %2833 = vmatprep.subr.bf16.mxu0 %v3307_v17  ;;  %v3341_v45 = vld [vmem:[%s4276_s17 + $0x64] ss:$16 sps:$4 sm:$0xff]   ;;  %v3343_v46 = vld [vmem:[%s4276_s17 + $0x6c] ss:$16 sps:$4 sm:$0xff]   ;;  %v3345_v47 = vld [vmem:[%s4276_s17 + $0x60] ss:$16 sps:$4 sm:$0xff]  }
 0x12a   : > { %2945 = vmatprep.subr.bf16.mxu1 %v3308_v18  ;;  %v3346_v48 = vld [vmem:[%s4276_s17 + $0x68] ss:$16 sps:$4 sm:$0xff]   ;;  %v3347_v49 = vld [vmem:[%s4276_s17 + $0x84] ss:$16 sps:$4 sm:$0xff]   ;;  %v3349_v50 = vld [vmem:[%s4276_s17 + $0x8c] ss:$16 sps:$4 sm:$0xff]  }
 0x12b   : > { %v3351_v51 = vld [vmem:[%s4276_s17 + $0x80] ss:$16 sps:$4 sm:$0xff]   ;;  %v3352_v52 = vld [vmem:[%s4276_s17 + $0x88] ss:$16 sps:$4 sm:$0xff]   ;;  %v3353_v53 = vld [vmem:[%s4276_s17 + $0xa4] ss:$16 sps:$4 sm:$0xff]  }
 0x12c   : > { %2834 = vmatpush3.bf16.msra.mxu0 %v3309_v19  ;;  %v3355_v54 = vld [vmem:[%s4276_s17 + $0xac] ss:$16 sps:$4 sm:$0xff]   ;;  %v3357_v55 = vld [vmem:[%s4276_s17 + $0xa0] ss:$16 sps:$4 sm:$0xff]   ;;  %v3358_v56 = vld [vmem:[%s4276_s17 + $0xa8] ss:$16 sps:$4 sm:$0xff]  }
 0x12d   : > { %2946 = vmatpush3.bf16.msra.mxu1 %v3310_v20  ;;  %2835 = vmatprep.subr.bf16.mxu0 %v3311_v21  ;;  %v3359_v57 = vld [vmem:[%s4276_s17 + $0xc4] ss:$16 sps:$4 sm:$0xff]   ;;  %v3361_v58 = vld [vmem:[%s4276_s17 + $0xcc] ss:$16 sps:$4 sm:$0xff]   ;;  %v3363_v59 = vld [vmem:[%s4276_s17 + $0xc0] ss:$16 sps:$4 sm:$0xff]  }
 0x12e   : > { %2947 = vmatprep.subr.bf16.mxu1 %v3312_v22  ;;  %v3364_v60 = vld [vmem:[%s4276_s17 + $0xc8] ss:$16 sps:$4 sm:$0xff]   ;;  %v3365_v61 = vld [vmem:[%s4276_s17 + $0xe4] ss:$16 sps:$4 sm:$0xff]   ;;  %v3367_v62 = vld [vmem:[%s4276_s17 + $0xec] ss:$16 sps:$4 sm:$0xff]  }
 0x12f   : > { %v3369_v63 = vld [vmem:[%s4276_s17 + $0xe0] ss:$16 sps:$4 sm:$0xff]   ;;  %v3370_v0 = vld [vmem:[%s4276_s17 + $0xe8] ss:$16 sps:$4 sm:$0xff]   ;;  %v3371_v1 = vld [vmem:[%s4276_s17 + $0x104] ss:$16 sps:$4 sm:$0xff]  }
 0x130   : > { %2836 = vmatpush3.bf16.msra.mxu0 %v3313_v23  ;;  %v3373_v2 = vld [vmem:[%s4276_s17 + $0x10c] ss:$16 sps:$4 sm:$0xff]   ;;  %v3375_v3 = vld [vmem:[%s4276_s17 + $0x100] ss:$16 sps:$4 sm:$0xff]   ;;  %v3376_v4 = vld [vmem:[%s4276_s17 + $0x108] ss:$16 sps:$4 sm:$0xff]  }
 0x131   : > { %2948 = vmatpush3.bf16.msra.mxu1 %v3314_v24  ;;  %2837 = vmatprep.subr.bf16.mxu0 %v3315_v25  ;;  %v3377_v5 = vld [vmem:[%s4276_s17 + $0x124] ss:$16 sps:$4 sm:$0xff]   ;;  %v3379_v6 = vld [vmem:[%s4276_s17 + $0x12c] ss:$16 sps:$4 sm:$0xff]   ;;  %v3381_v7 = vld [vmem:[%s4276_s17 + $0x120] ss:$16 sps:$4 sm:$0xff]  }
 0x132   : > { %2949 = vmatprep.subr.bf16.mxu1 %v3316_v26  ;;  %v3382_v8 = vld [vmem:[%s4276_s17 + $0x128] ss:$16 sps:$4 sm:$0xff]   ;;  %v3383_v9 = vld [vmem:[%s4276_s17 + $0x144] ss:$16 sps:$4 sm:$0xff]   ;;  %v3385_v10 = vld [vmem:[%s4276_s17 + $0x14c] ss:$16 sps:$4 sm:$0xff]  }
 0x133   : > { %v3387_v11 = vld [vmem:[%s4276_s17 + $0x140] ss:$16 sps:$4 sm:$0xff]   ;;  %v3388_v12 = vld [vmem:[%s4276_s17 + $0x148] ss:$16 sps:$4 sm:$0xff]   ;;  %v3389_v13 = vld [vmem:[%s4276_s17 + $0x164] ss:$16 sps:$4 sm:$0xff]  }
 0x134   : > { %2838 = vmatpush3.bf16.msra.mxu0 %v3317_v27  ;;  %v3391_v14 = vld [vmem:[%s4276_s17 + $0x16c] ss:$16 sps:$4 sm:$0xff]   ;;  %v3393_v15 = vld [vmem:[%s4276_s17 + $0x160] ss:$16 sps:$4 sm:$0xff]   ;;  %v3394_v16 = vld [vmem:[%s4276_s17 + $0x168] ss:$16 sps:$4 sm:$0xff]  }
 0x135   : > { %2950 = vmatpush3.bf16.msra.mxu1 %v3318_v28  ;;  %2839 = vmatprep.subr.bf16.mxu0 %v3319_v29  ;;  %v3395_v17 = vld [vmem:[%s4276_s17 + $0x184] ss:$16 sps:$4 sm:$0xff]   ;;  %v3397_v18 = vld [vmem:[%s4276_s17 + $0x18c] ss:$16 sps:$4 sm:$0xff]   ;;  %v3399_v19 = vld [vmem:[%s4276_s17 + $0x180] ss:$16 sps:$4 sm:$0xff]  }
 0x136   : > { %2951 = vmatprep.subr.bf16.mxu1 %v3320_v30  ;;  %v3400_v20 = vld [vmem:[%s4276_s17 + $0x188] ss:$16 sps:$4 sm:$0xff]   ;;  %v3401_v21 = vld [vmem:[%s4276_s17 + $0x1a4] ss:$16 sps:$4 sm:$0xff]   ;;  %v3403_v22 = vld [vmem:[%s4276_s17 + $0x1ac] ss:$16 sps:$4 sm:$0xff]  }
 0x137   : > { %v3405_v23 = vld [vmem:[%s4276_s17 + $0x1a0] ss:$16 sps:$4 sm:$0xff]   ;;  %v3406_v24 = vld [vmem:[%s4276_s17 + $0x1a8] ss:$16 sps:$4 sm:$0xff]   ;;  %v3407_v25 = vld [vmem:[%s4276_s17 + $0x1c4] ss:$16 sps:$4 sm:$0xff]  }
 0x138   : > { %2840 = vmatpush3.bf16.msra.mxu0 %v3321_v31  ;;  %v3409_v26 = vld [vmem:[%s4276_s17 + $0x1cc] ss:$16 sps:$4 sm:$0xff]   ;;  %v3411_v27 = vld [vmem:[%s4276_s17 + $0x1c0] ss:$16 sps:$4 sm:$0xff]   ;;  %v3412_v28 = vld [vmem:[%s4276_s17 + $0x1c8] ss:$16 sps:$4 sm:$0xff]  }
 0x139   : > { %2952 = vmatpush3.bf16.msra.mxu1 %v3322_v32  ;;  %v3413_v29 = vld [vmem:[%s4276_s17 + $0x1e4] ss:$16 sps:$4 sm:$0xff]   ;;  %v3415_v30 = vld [vmem:[%s4276_s17 + $0x1ec] ss:$16 sps:$4 sm:$0xff]   ;;  %v3417_v31 = vld [vmem:[%s4276_s17 + $0x1e0] ss:$16 sps:$4 sm:$0xff]  }
 0x13a   : > { %v3418_v32 = vld [vmem:[%s4276_s17 + $0x1e8] ss:$16 sps:$4 sm:$0xff]  }
 0x13b   : > { %1153 = vmatmul.mubr.bf16.vlgmr.msra.gmra.mrb[0].mxu0 %v3323_v33 }
 0x13c   : > { %1314 = vmatmul.mubr.bf16.vlgmr.msra.gmra.mrb[0].mxu1 %v3326_v35  ;;  %1160 = vmatprep.mubr.bf16.mxu0 %v3329_v37 }
 0x13d   : > { %1321 = vmatprep.mubr.bf16.mxu1 %v3331_v38 }
 0x143   : > { %1161 = vmatmul.mubr.bf16.gmra.mrb[4].mxu0 %v3333_v39 }
 0x144   : > { %1322 = vmatmul.mubr.bf16.gmra.mrb[4].mxu1 %v3334_v40  ;;  %1168 = vmatprep.mubr.bf16.mxu0 %v3335_v41 }
 0x145   : > { %1329 = vmatprep.mubr.bf16.mxu1 %v3337_v42  ;;  %v448_v42 = vld [vmem:[#allocation2] sm:$0xff] }
 0x14b   : > { %1169 = vmatmul.mubr.bf16.gmra.mrb[8].mxu0 %v3339_v43 }
 0x14c   : > { %1330 = vmatmul.mubr.bf16.gmra.mrb[8].mxu1 %v3340_v44  ;;  %1176 = vmatprep.mubr.bf16.mxu0 %v3341_v45 }
 0x14d   : > { %1337 = vmatprep.mubr.bf16.mxu1 %v3343_v46 }
 0x153   : > { %1177 = vmatmul.mubr.bf16.gmra.mrb[12].mxu0 %v3345_v47  ;;  %v449_v47 = vld [vmem:[#allocation2 + $0x8] sm:$0xff] }
 0x154   : > { %1338 = vmatmul.mubr.bf16.gmra.mrb[12].mxu1 %v3346_v48  ;;  %1184 = vmatprep.mubr.bf16.mxu0 %v3347_v49 }
 0x155   : > { %1345 = vmatprep.mubr.bf16.mxu1 %v3349_v50 }
 0x15b   : > { %1185 = vmatmul.mubr.bf16.gmra.mrb[16].mxu0 %v3351_v51 }
 0x15c   : > { %1346 = vmatmul.mubr.bf16.gmra.mrb[16].mxu1 %v3352_v52  ;;  %1192 = vmatprep.mubr.bf16.mxu0 %v3353_v53 }
 0x15d   : > { %1353 = vmatprep.mubr.bf16.mxu1 %v3355_v54 }
 0x163   : > { %1193 = vmatmul.mubr.bf16.gmra.mrb[20].mxu0 %v3357_v55 }
 0x164   : > { %1354 = vmatmul.mubr.bf16.gmra.mrb[20].mxu1 %v3358_v56  ;;  %1200 = vmatprep.mubr.bf16.mxu0 %v3359_v57 }
 0x165   : > { %1361 = vmatprep.mubr.bf16.mxu1 %v3361_v58 }
 0x16b   : > { %1201 = vmatmul.mubr.bf16.gmra.mrb[24].mxu0 %v3363_v59 }
 0x16c   : > { %1362 = vmatmul.mubr.bf16.gmra.mrb[24].mxu1 %v3364_v60  ;;  %1208 = vmatprep.mubr.bf16.mxu0 %v3365_v61  ;;  %v450_v60 = vld [vmem:[#allocation2 + $0x10] sm:$0xff] }
 0x16d   : > { %1369 = vmatprep.mubr.bf16.mxu1 %v3367_v62 }
 0x173   : > { %1209 = vmatmul.mubr.bf16.gmra.mrb[28].mxu0 %v3369_v63 }
 0x174   : > { %1370 = vmatmul.mubr.bf16.gmra.mrb[28].mxu1 %v3370_v0  ;;  %1216 = vmatprep.mubr.bf16.mxu0 %v3371_v1  ;;  %v451_v1 = vld [vmem:[#allocation2 + $0x18] sm:$0xff] }
 0x175   : > { %1377 = vmatprep.mubr.bf16.mxu1 %v3373_v2 }
 0x17b   : > { %1217 = vmatmul.mubr.bf16.gmra.mrb[32].mxu0 %v3375_v3 }
 0x17c   : > { %1378 = vmatmul.mubr.bf16.gmra.mrb[32].mxu1 %v3376_v4  ;;  %1224 = vmatprep.mubr.bf16.mxu0 %v3377_v5 }
 0x17d   : > { %1385 = vmatprep.mubr.bf16.mxu1 %v3379_v6 }
 0x183   : > { %1225 = vmatmul.mubr.bf16.gmra.mrb[36].mxu0 %v3381_v7 }
 0x184   : > { %1386 = vmatmul.mubr.bf16.gmra.mrb[36].mxu1 %v3382_v8  ;;  %1232 = vmatprep.mubr.bf16.mxu0 %v3383_v9 }
 0x185   : > { %1393 = vmatprep.mubr.bf16.mxu1 %v3385_v10 }
 0x18b   : > { %1233 = vmatmul.mubr.bf16.gmra.mrb[40].mxu0 %v3387_v11 }
 0x18c   : > { %1394 = vmatmul.mubr.bf16.gmra.mrb[40].mxu1 %v3388_v12  ;;  %1240 = vmatprep.mubr.bf16.mxu0 %v3389_v13 }
 0x18d   : > { %1401 = vmatprep.mubr.bf16.mxu1 %v3391_v14  ;;  %v452_v14 = vld [vmem:[#allocation2 + $0x20] sm:$0xff] }
 0x193   : > { %1241 = vmatmul.mubr.bf16.gmra.mrb[44].mxu0 %v3393_v15 }
 0x194   : > { %1402 = vmatmul.mubr.bf16.gmra.mrb[44].mxu1 %v3394_v16  ;;  %1248 = vmatprep.mubr.bf16.mxu0 %v3395_v17 }
 0x195   : > { %1409 = vmatprep.mubr.bf16.mxu1 %v3397_v18 }
 0x19b   : > { %1249 = vmatmul.mubr.bf16.gmra.mrb[48].mxu0 %v3399_v19  ;;  %v453_v19 = vld [vmem:[#allocation2 + $0x28] sm:$0xff] }
 0x19c   : > { %1410 = vmatmul.mubr.bf16.gmra.mrb[48].mxu1 %v3400_v20  ;;  %1256 = vmatprep.mubr.bf16.mxu0 %v3401_v21 }
 0x19d   : > { %1417 = vmatprep.mubr.bf16.mxu1 %v3403_v22 }
 0x1a3   : > { %1257 = vmatmul.mubr.bf16.gmra.mrb[52].mxu0 %v3405_v23 }
 0x1a4   : > { %1418 = vmatmul.mubr.bf16.gmra.mrb[52].mxu1 %v3406_v24  ;;  %1264 = vmatprep.mubr.bf16.mxu0 %v3407_v25 }
 0x1a5   : > { %1425 = vmatprep.mubr.bf16.mxu1 %v3409_v26 }
 0x1ab   : > { %1265 = vmatmul.mubr.bf16.gmra.mrb[56].mxu0 %v3411_v27 }
 0x1ac   : > { %1426 = vmatmul.mubr.bf16.gmra.mrb[56].mxu1 %v3412_v28  ;;  %1272 = vmatprep.mubr.bf16.mxu0 %v3413_v29 }
 0x1ad   : > { %1433 = vmatprep.mubr.bf16.mxu1 %v3415_v30 }
 0x1b3   : > { %1273 = vmatmul.mubr.bf16.gmra.mrb[60].mxu0 %v3417_v31 }
 0x1b4   : > { %1434 = vmatmul.mubr.bf16.gmra.mrb[60].mxu1 %v3418_v32  ;;  %v454_v32 = vld [vmem:[#allocation2 + $0x30] sm:$0xff] }
 0x20e   : > { %v2841_v33 = vpop.f32.mrb[0].mxu0 }
 0x20f   : > { %v2953_v34 = vpop.f32.mrb[0].mxu1  ;;  %v2842_v35 = vpop.f32.mrb[1].mxu0 }
 0x210   : > { %v2843_v36 = vadd.f32 %v2842_v35, %v2841_v33  ;;  %v2954_v37 = vpop.f32.mrb[1].mxu1  ;;  %v2844_v38 = vpop.f32.mrb[2].mxu0 }
 0x211   : > { %v2955_v39 = vadd.f32 %v2954_v37, %v2953_v34  ;;  %v2956_v40 = vpop.f32.mrb[2].mxu1  ;;  %v2845_v41 = vpop.f32.mrb[3].mxu0  ;;  %v455_v37 = vld [vmem:[#allocation2 + $0x38] sm:$0xff] }
 0x212   : > { %v2846_v43 = vadd.f32 %v2845_v41, %v2844_v38  ;;  %v2957_v44 = vpop.f32.mrb[3].mxu1 }
 0x213   : > { %v1316_v45 = vadd.f32 %v2955_v39, %v2843_v36  ;;  %v2958_v46 = vadd.f32 %v2957_v44, %v2956_v40 }
 0x215   : > { %v1442_v48 = vadd.f32 %v1316_v45, %v448_v42  ;;  %v1319_v49 = vadd.f32 %v2958_v46, %v2846_v43 }
 0x216   : > { %v2847_v50 = vpop.f32.mrb[4].mxu0 }
 0x217   : > { %1474 = vst [vmem:[#allocation2] sm:$0xff] %v1442_v48  ;;  %v1443_v51 = vadd.f32 %v1319_v49, %v449_v47  ;;  %v2959_v52 = vpop.f32.mrb[4].mxu1  ;;  %v2848_v53 = vpop.f32.mrb[5].mxu0 }
 0x218   : > { %v2849_v54 = vadd.f32 %v2848_v53, %v2847_v50  ;;  %v2960_v55 = vpop.f32.mrb[5].mxu1  ;;  %v2850_v56 = vpop.f32.mrb[6].mxu0  ;;  %v456_v50 = vld [vmem:[#allocation2 + $0x40] sm:$0xff] }
 0x219   : > { %1475 = vst [vmem:[#allocation2 + $0x8] sm:$0xff] %v1443_v51  ;;  %v2961_v57 = vadd.f32 %v2960_v55, %v2959_v52  ;;  %v2962_v58 = vpop.f32.mrb[6].mxu1  ;;  %v2851_v59 = vpop.f32.mrb[7].mxu0  ;;  %v457_v55 = vld [vmem:[#allocation2 + $0x48] sm:$0xff] }
 0x21a   : > { %v2852_v61 = vadd.f32 %v2851_v59, %v2850_v56  ;;  %v2963_v62 = vpop.f32.mrb[7].mxu1 }
 0x21b   : > { %v1324_v63 = vadd.f32 %v2961_v57, %v2849_v54  ;;  %v2964_v0 = vadd.f32 %v2963_v62, %v2962_v58 }
 0x21d   : > { %v1444_v2 = vadd.f32 %v1324_v63, %v450_v60  ;;  %v1327_v3 = vadd.f32 %v2964_v0, %v2852_v61 }
 0x21e   : > { %v2853_v4 = vpop.f32.mrb[8].mxu0 }
 0x21f   : > { %1476 = vst [vmem:[#allocation2 + $0x10] sm:$0xff] %v1444_v2  ;;  %v1445_v5 = vadd.f32 %v1327_v3, %v451_v1  ;;  %v2965_v6 = vpop.f32.mrb[8].mxu1  ;;  %v2854_v7 = vpop.f32.mrb[9].mxu0 }
 0x220   : > { %v2855_v8 = vadd.f32 %v2854_v7, %v2853_v4  ;;  %v2966_v9 = vpop.f32.mrb[9].mxu1  ;;  %v2856_v10 = vpop.f32.mrb[10].mxu0  ;;  %v458_v4 = vld [vmem:[#allocation2 + $0x50] sm:$0xff] }
 0x221   : > { %1477 = vst [vmem:[#allocation2 + $0x18] sm:$0xff] %v1445_v5  ;;  %v2967_v11 = vadd.f32 %v2966_v9, %v2965_v6  ;;  %v2968_v12 = vpop.f32.mrb[10].mxu1  ;;  %v2857_v13 = vpop.f32.mrb[11].mxu0  ;;  %v459_v9 = vld [vmem:[#allocation2 + $0x58] sm:$0xff] }
 0x222   : > { %v2858_v15 = vadd.f32 %v2857_v13, %v2856_v10  ;;  %v2969_v16 = vpop.f32.mrb[11].mxu1 }
 0x223   : > { %v1332_v17 = vadd.f32 %v2967_v11, %v2855_v8  ;;  %v2970_v18 = vadd.f32 %v2969_v16, %v2968_v12 }
 0x225   : > { %v1446_v20 = vadd.f32 %v1332_v17, %v452_v14  ;;  %v1335_v21 = vadd.f32 %v2970_v18, %v2858_v15 }
 0x226   : > { %v2859_v22 = vpop.f32.mrb[12].mxu0 }
 0x227   : > { %1478 = vst [vmem:[#allocation2 + $0x20] sm:$0xff] %v1446_v20  ;;  %v1447_v23 = vadd.f32 %v1335_v21, %v453_v19  ;;  %v2971_v24 = vpop.f32.mrb[12].mxu1  ;;  %v2860_v25 = vpop.f32.mrb[13].mxu0 }
 0x228   : > { %v2861_v26 = vadd.f32 %v2860_v25, %v2859_v22  ;;  %v2972_v27 = vpop.f32.mrb[13].mxu1  ;;  %v2862_v28 = vpop.f32.mrb[14].mxu0  ;;  %v460_v22 = vld [vmem:[#allocation2 + $0x60] sm:$0xff] }
 0x229   : > { %1479 = vst [vmem:[#allocation2 + $0x28] sm:$0xff] %v1447_v23  ;;  %v2973_v29 = vadd.f32 %v2972_v27, %v2971_v24  ;;  %v2974_v30 = vpop.f32.mrb[14].mxu1  ;;  %v2863_v31 = vpop.f32.mrb[15].mxu0  ;;  %v461_v27 = vld [vmem:[#allocation2 + $0x68] sm:$0xff] }
 0x22a   : > { %v2864_v33 = vadd.f32 %v2863_v31, %v2862_v28  ;;  %v2975_v34 = vpop.f32.mrb[15].mxu1 }
 0x22b   : > { %v1340_v35 = vadd.f32 %v2973_v29, %v2861_v26  ;;  %v2976_v36 = vadd.f32 %v2975_v34, %v2974_v30 }
 0x22d   : > { %v1448_v38 = vadd.f32 %v1340_v35, %v454_v32  ;;  %v1343_v39 = vadd.f32 %v2976_v36, %v2864_v33 }
 0x22e   : > { %v2865_v40 = vpop.f32.mrb[16].mxu0 }
 0x22f   : > { %1480 = vst [vmem:[#allocation2 + $0x30] sm:$0xff] %v1448_v38  ;;  %v1449_v41 = vadd.f32 %v1343_v39, %v455_v37  ;;  %v2977_v42 = vpop.f32.mrb[16].mxu1  ;;  %v2866_v43 = vpop.f32.mrb[17].mxu0 }
 0x230   : > { %v2867_v44 = vadd.f32 %v2866_v43, %v2865_v40  ;;  %v2978_v45 = vpop.f32.mrb[17].mxu1  ;;  %v2868_v46 = vpop.f32.mrb[18].mxu0  ;;  %v462_v40 = vld [vmem:[#allocation2 + $0x70] sm:$0xff] }
 0x231   : > { %1481 = vst [vmem:[#allocation2 + $0x38] sm:$0xff] %v1449_v41  ;;  %v2979_v47 = vadd.f32 %v2978_v45, %v2977_v42  ;;  %v2980_v48 = vpop.f32.mrb[18].mxu1  ;;  %v2869_v49 = vpop.f32.mrb[19].mxu0  ;;  %v463_v45 = vld [vmem:[#allocation2 + $0x78] sm:$0xff] }
 0x232   : > { %v2870_v51 = vadd.f32 %v2869_v49, %v2868_v46  ;;  %v2981_v52 = vpop.f32.mrb[19].mxu1 }
 0x233   : > { %v1348_v53 = vadd.f32 %v2979_v47, %v2867_v44  ;;  %v2982_v54 = vadd.f32 %v2981_v52, %v2980_v48 }
 0x235   : > { %v1450_v56 = vadd.f32 %v1348_v53, %v456_v50  ;;  %v1351_v57 = vadd.f32 %v2982_v54, %v2870_v51 }
 0x236   : > { %v2871_v58 = vpop.f32.mrb[20].mxu0 }
 0x237   : > { %1482 = vst [vmem:[#allocation2 + $0x40] sm:$0xff] %v1450_v56  ;;  %v1451_v59 = vadd.f32 %v1351_v57, %v457_v55  ;;  %v2983_v60 = vpop.f32.mrb[20].mxu1  ;;  %v2872_v61 = vpop.f32.mrb[21].mxu0 }
 0x238   : > { %v2873_v62 = vadd.f32 %v2872_v61, %v2871_v58  ;;  %v2984_v63 = vpop.f32.mrb[21].mxu1  ;;  %v2874_v0 = vpop.f32.mrb[22].mxu0  ;;  %v464_v58 = vld [vmem:[#allocation2 + $0x80] sm:$0xff] }
 0x239   : > { %1483 = vst [vmem:[#allocation2 + $0x48] sm:$0xff] %v1451_v59  ;;  %v2985_v1 = vadd.f32 %v2984_v63, %v2983_v60  ;;  %v2986_v2 = vpop.f32.mrb[22].mxu1  ;;  %v2875_v3 = vpop.f32.mrb[23].mxu0  ;;  %v465_v63 = vld [vmem:[#allocation2 + $0x88] sm:$0xff] }
 0x23a   : > { %v2876_v5 = vadd.f32 %v2875_v3, %v2874_v0  ;;  %v2987_v6 = vpop.f32.mrb[23].mxu1 }
 0x23b   : > { %v1356_v7 = vadd.f32 %v2985_v1, %v2873_v62  ;;  %v2988_v8 = vadd.f32 %v2987_v6, %v2986_v2 }
 0x23d   : > { %v1452_v10 = vadd.f32 %v1356_v7, %v458_v4  ;;  %v1359_v11 = vadd.f32 %v2988_v8, %v2876_v5 }
 0x23e   : > { %v2877_v12 = vpop.f32.mrb[24].mxu0 }
 0x23f   : > { %1484 = vst [vmem:[#allocation2 + $0x50] sm:$0xff] %v1452_v10  ;;  %v1453_v13 = vadd.f32 %v1359_v11, %v459_v9  ;;  %v2989_v14 = vpop.f32.mrb[24].mxu1  ;;  %v2878_v15 = vpop.f32.mrb[25].mxu0 }
 0x240   : > { %v2879_v16 = vadd.f32 %v2878_v15, %v2877_v12  ;;  %v2990_v17 = vpop.f32.mrb[25].mxu1  ;;  %v2880_v18 = vpop.f32.mrb[26].mxu0  ;;  %v466_v12 = vld [vmem:[#allocation2 + $0x90] sm:$0xff] }
 0x241   : > { %1485 = vst [vmem:[#allocation2 + $0x58] sm:$0xff] %v1453_v13  ;;  %v2991_v19 = vadd.f32 %v2990_v17, %v2989_v14  ;;  %v2992_v20 = vpop.f32.mrb[26].mxu1  ;;  %v2881_v21 = vpop.f32.mrb[27].mxu0  ;;  %v467_v17 = vld [vmem:[#allocation2 + $0x98] sm:$0xff] }
 0x242   : > { %v2882_v23 = vadd.f32 %v2881_v21, %v2880_v18  ;;  %v2993_v24 = vpop.f32.mrb[27].mxu1 }
 0x243   : > { %v1364_v25 = vadd.f32 %v2991_v19, %v2879_v16  ;;  %v2994_v26 = vadd.f32 %v2993_v24, %v2992_v20 }
 0x245   : > { %v1454_v28 = vadd.f32 %v1364_v25, %v460_v22  ;;  %v1367_v29 = vadd.f32 %v2994_v26, %v2882_v23 }
 0x246   : > { %v2883_v30 = vpop.f32.mrb[28].mxu0 }
 0x247   : > { %1486 = vst [vmem:[#allocation2 + $0x60] sm:$0xff] %v1454_v28  ;;  %v1455_v31 = vadd.f32 %v1367_v29, %v461_v27  ;;  %v2995_v32 = vpop.f32.mrb[28].mxu1  ;;  %v2884_v33 = vpop.f32.mrb[29].mxu0 }
 0x248   : > { %v2885_v34 = vadd.f32 %v2884_v33, %v2883_v30  ;;  %v2996_v35 = vpop.f32.mrb[29].mxu1  ;;  %v2886_v36 = vpop.f32.mrb[30].mxu0  ;;  %v468_v30 = vld [vmem:[#allocation2 + $0xa0] sm:$0xff] }
 0x249   : > { %1487 = vst [vmem:[#allocation2 + $0x68] sm:$0xff] %v1455_v31  ;;  %v2997_v37 = vadd.f32 %v2996_v35, %v2995_v32  ;;  %v2998_v38 = vpop.f32.mrb[30].mxu1  ;;  %v2887_v39 = vpop.f32.mrb[31].mxu0  ;;  %v469_v35 = vld [vmem:[#allocation2 + $0xa8] sm:$0xff] }
 0x24a   : > { %v2888_v41 = vadd.f32 %v2887_v39, %v2886_v36  ;;  %v2999_v42 = vpop.f32.mrb[31].mxu1 }
 0x24b   : > { %v1372_v43 = vadd.f32 %v2997_v37, %v2885_v34  ;;  %v3000_v44 = vadd.f32 %v2999_v42, %v2998_v38 }
 0x24d   : > { %v1456_v46 = vadd.f32 %v1372_v43, %v462_v40  ;;  %v1375_v47 = vadd.f32 %v3000_v44, %v2888_v41 }
 0x24e   : > { %v2889_v48 = vpop.f32.mrb[32].mxu0 }
 0x24f   : > { %1488 = vst [vmem:[#allocation2 + $0x70] sm:$0xff] %v1456_v46  ;;  %v1457_v49 = vadd.f32 %v1375_v47, %v463_v45  ;;  %v3001_v50 = vpop.f32.mrb[32].mxu1  ;;  %v2890_v51 = vpop.f32.mrb[33].mxu0 }
 0x250   : > { %v2891_v52 = vadd.f32 %v2890_v51, %v2889_v48  ;;  %v3002_v53 = vpop.f32.mrb[33].mxu1  ;;  %v2892_v54 = vpop.f32.mrb[34].mxu0  ;;  %v470_v48 = vld [vmem:[#allocation2 + $0xb0] sm:$0xff] }
 0x251   : > { %1489 = vst [vmem:[#allocation2 + $0x78] sm:$0xff] %v1457_v49  ;;  %v3003_v55 = vadd.f32 %v3002_v53, %v3001_v50  ;;  %v3004_v56 = vpop.f32.mrb[34].mxu1  ;;  %v2893_v57 = vpop.f32.mrb[35].mxu0  ;;  %v471_v53 = vld [vmem:[#allocation2 + $0xb8] sm:$0xff] }
 0x252   : > { %v2894_v59 = vadd.f32 %v2893_v57, %v2892_v54  ;;  %v3005_v60 = vpop.f32.mrb[35].mxu1 }
 0x253   : > { %v1380_v61 = vadd.f32 %v3003_v55, %v2891_v52  ;;  %v3006_v62 = vadd.f32 %v3005_v60, %v3004_v56 }
 0x255   : > { %v1458_v0 = vadd.f32 %v1380_v61, %v464_v58  ;;  %v1383_v1 = vadd.f32 %v3006_v62, %v2894_v59 }
 0x256   : > { %v2895_v2 = vpop.f32.mrb[36].mxu0 }
 0x257   : > { %1490 = vst [vmem:[#allocation2 + $0x80] sm:$0xff] %v1458_v0  ;;  %v1459_v3 = vadd.f32 %v1383_v1, %v465_v63  ;;  %v3007_v4 = vpop.f32.mrb[36].mxu1  ;;  %v2896_v5 = vpop.f32.mrb[37].mxu0 }
 0x258   : > { %v2897_v6 = vadd.f32 %v2896_v5, %v2895_v2  ;;  %v3008_v7 = vpop.f32.mrb[37].mxu1  ;;  %v2898_v8 = vpop.f32.mrb[38].mxu0  ;;  %v472_v2 = vld [vmem:[#allocation2 + $0xc0] sm:$0xff] }
 0x259   : > { %1491 = vst [vmem:[#allocation2 + $0x88] sm:$0xff] %v1459_v3  ;;  %v3009_v9 = vadd.f32 %v3008_v7, %v3007_v4  ;;  %v3010_v10 = vpop.f32.mrb[38].mxu1  ;;  %v2899_v11 = vpop.f32.mrb[39].mxu0  ;;  %v473_v7 = vld [vmem:[#allocation2 + $0xc8] sm:$0xff] }
 0x25a   : > { %v2900_v13 = vadd.f32 %v2899_v11, %v2898_v8  ;;  %v3011_v14 = vpop.f32.mrb[39].mxu1 }
 0x25b   : > { %v1388_v15 = vadd.f32 %v3009_v9, %v2897_v6  ;;  %v3012_v16 = vadd.f32 %v3011_v14, %v3010_v10 }
 0x25d   : > { %v1460_v18 = vadd.f32 %v1388_v15, %v466_v12  ;;  %v1391_v19 = vadd.f32 %v3012_v16, %v2900_v13 }
 0x25e   : > { %v2901_v20 = vpop.f32.mrb[40].mxu0 }
 0x25f   : > { %1492 = vst [vmem:[#allocation2 + $0x90] sm:$0xff] %v1460_v18  ;;  %v1461_v21 = vadd.f32 %v1391_v19, %v467_v17  ;;  %v3013_v22 = vpop.f32.mrb[40].mxu1  ;;  %v2902_v23 = vpop.f32.mrb[41].mxu0 }
 0x260   : > { %v2903_v24 = vadd.f32 %v2902_v23, %v2901_v20  ;;  %v3014_v25 = vpop.f32.mrb[41].mxu1  ;;  %v2904_v26 = vpop.f32.mrb[42].mxu0  ;;  %v474_v20 = vld [vmem:[#allocation2 + $0xd0] sm:$0xff] }
 0x261   : > { %1493 = vst [vmem:[#allocation2 + $0x98] sm:$0xff] %v1461_v21  ;;  %v3015_v27 = vadd.f32 %v3014_v25, %v3013_v22  ;;  %v3016_v28 = vpop.f32.mrb[42].mxu1  ;;  %v2905_v29 = vpop.f32.mrb[43].mxu0  ;;  %v475_v25 = vld [vmem:[#allocation2 + $0xd8] sm:$0xff] }
 0x262   : > { %v2906_v31 = vadd.f32 %v2905_v29, %v2904_v26  ;;  %v3017_v32 = vpop.f32.mrb[43].mxu1 }
 0x263   : > { %v1396_v33 = vadd.f32 %v3015_v27, %v2903_v24  ;;  %v3018_v34 = vadd.f32 %v3017_v32, %v3016_v28 }
 0x265   : > { %v1462_v36 = vadd.f32 %v1396_v33, %v468_v30  ;;  %v1399_v37 = vadd.f32 %v3018_v34, %v2906_v31 }
 0x266   : > { %v2907_v38 = vpop.f32.mrb[44].mxu0 }
 0x267   : > { %1494 = vst [vmem:[#allocation2 + $0xa0] sm:$0xff] %v1462_v36  ;;  %v1463_v39 = vadd.f32 %v1399_v37, %v469_v35  ;;  %v3019_v40 = vpop.f32.mrb[44].mxu1  ;;  %v2908_v41 = vpop.f32.mrb[45].mxu0 }
 0x268   : > { %v2909_v42 = vadd.f32 %v2908_v41, %v2907_v38  ;;  %v3020_v43 = vpop.f32.mrb[45].mxu1  ;;  %v2910_v44 = vpop.f32.mrb[46].mxu0  ;;  %v476_v38 = vld [vmem:[#allocation2 + $0xe0] sm:$0xff] }
 0x269   : > { %1495 = vst [vmem:[#allocation2 + $0xa8] sm:$0xff] %v1463_v39  ;;  %v3021_v45 = vadd.f32 %v3020_v43, %v3019_v40  ;;  %v3022_v46 = vpop.f32.mrb[46].mxu1  ;;  %v2911_v47 = vpop.f32.mrb[47].mxu0  ;;  %v477_v43 = vld [vmem:[#allocation2 + $0xe8] sm:$0xff] }
 0x26a   : > { %v2912_v49 = vadd.f32 %v2911_v47, %v2910_v44  ;;  %v3023_v50 = vpop.f32.mrb[47].mxu1 }
 0x26b   : > { %v1404_v51 = vadd.f32 %v3021_v45, %v2909_v42  ;;  %v3024_v52 = vadd.f32 %v3023_v50, %v3022_v46 }
 0x26d   : > { %v1464_v54 = vadd.f32 %v1404_v51, %v470_v48  ;;  %v1407_v55 = vadd.f32 %v3024_v52, %v2912_v49 }
 0x26e   : > { %v2913_v56 = vpop.f32.mrb[48].mxu0 }
 0x26f   : > { %1496 = vst [vmem:[#allocation2 + $0xb0] sm:$0xff] %v1464_v54  ;;  %v1465_v57 = vadd.f32 %v1407_v55, %v471_v53  ;;  %v3025_v58 = vpop.f32.mrb[48].mxu1  ;;  %v2914_v59 = vpop.f32.mrb[49].mxu0 }
 0x270   : > { %v2915_v60 = vadd.f32 %v2914_v59, %v2913_v56  ;;  %v3026_v61 = vpop.f32.mrb[49].mxu1  ;;  %v2916_v62 = vpop.f32.mrb[50].mxu0  ;;  %v478_v56 = vld [vmem:[#allocation2 + $0xf0] sm:$0xff] }
 0x271   : > { %1497 = vst [vmem:[#allocation2 + $0xb8] sm:$0xff] %v1465_v57  ;;  %v3027_v63 = vadd.f32 %v3026_v61, %v3025_v58  ;;  %v3028_v0 = vpop.f32.mrb[50].mxu1  ;;  %v2917_v1 = vpop.f32.mrb[51].mxu0  ;;  %v479_v61 = vld [vmem:[#allocation2 + $0xf8] sm:$0xff] }
 0x272   : > { %v2918_v3 = vadd.f32 %v2917_v1, %v2916_v62  ;;  %v3029_v4 = vpop.f32.mrb[51].mxu1  ;;  %v3419_v1 = vld [vmem:[#allocation11 + $0x4] ss:$8 sps:$4 sm:$0xff] (!%p2765_p8)  }
 0x273   : > { %v1412_v5 = vadd.f32 %v3027_v63, %v2915_v60  ;;  %v3030_v6 = vadd.f32 %v3029_v4, %v3028_v0  ;;  %1798 = vmatprep.subr.bf16.mxu1 (!%p2765_p8), %v3419_v1  ;;  %v3423_v4 = vld [vmem:[#allocation11] ss:$8 sps:$4 sm:$0xff] (!%p2765_p8)  }
 0x274   : > { %1799 = vmatpush1.bf16.msra.mxu1 (!%p2765_p8), %v3423_v4  ;;  %v1527_v4 = vld [vmem:[#allocation2 + $0x88] sm:$0xff] (!%p2765_p8) }
 0x275   : > { %v1466_v8 = vadd.f32 %v1412_v5, %v472_v2  ;;  %v1415_v9 = vadd.f32 %v3030_v6, %v2918_v3  ;;  %v3421_v2 = vld [vmem:[#allocation9 + $0x4] ss:$8 sps:$4 sm:$0xff] (!%p2765_p8)   ;;  %v3835_v3 = vmov (!%p2765_p8), 0   ;;  %v3424_v5 = vld [vmem:[#allocation9] ss:$8 sps:$4 sm:$0xff] (!%p2765_p8)  }
 0x276   : > { %v2919_v10 = vpop.f32.mrb[52].mxu0  ;;  %1830 = vmatprep.mubr.bf16.mxu1 (!%p2765_p8), %v3835_v3  ;;  %2103 = vmatprep.mubr.bf16.mxu0 (!%p2765_p8), %v3835_v3  ;;  %v3425_v6 = vld [vmem:[#allocation11 + $0x14] ss:$8 sps:$4 sm:$0xff] (!%p2765_p8)  }
 0x277   : > { %1498 = vst [vmem:[#allocation2 + $0xc0] sm:$0xff] %v1466_v8  ;;  %v1467_v11 = vadd.f32 %v1415_v9, %v473_v7  ;;  %v3031_v12 = vpop.f32.mrb[52].mxu1  ;;  %v2920_v13 = vpop.f32.mrb[53].mxu0  ;;  %2071 = vmatprep.subr.bf16.mxu0 (!%p2765_p8), %v3421_v2  ;;  %v3427_v7 = vld [vmem:[#allocation9 + $0x14] ss:$8 sps:$4 sm:$0xff] (!%p2765_p8)   ;;  %1800 = vmatprep.subr.bf16.mxu1 (!%p2765_p8), %v3425_v6  ;;  %v1526_v2 = vld [vmem:[#allocation2 + $0x80] sm:$0xff] (!%p2765_p8) }
 0x278   : > { %v2921_v14 = vadd.f32 %v2920_v13, %v2919_v10  ;;  %v3032_v15 = vpop.f32.mrb[53].mxu1  ;;  %v2922_v16 = vpop.f32.mrb[54].mxu0  ;;  %2072 = vmatpush1.bf16.msra.mxu0 (!%p2765_p8), %v3424_v5  ;;  %v3429_v8 = vld [vmem:[#allocation11 + $0x10] ss:$8 sps:$4 sm:$0xff] (!%p2765_p8)   ;;  %v3431_v10 = vld [vmem:[#allocation11 + $0x24] ss:$8 sps:$4 sm:$0xff] (!%p2765_p8)   ;;  %v1550_v6 = vpack.c.bf16 (!%p2765_p8), %v1527_v4, %v1526_v2 }
 0x279   : > { %1499 = vst [vmem:[#allocation2 + $0xc8] sm:$0xff] %v1467_v11  ;;  %v3033_v17 = vadd.f32 %v3032_v15, %v3031_v12  ;;  %v3034_v18 = vpop.f32.mrb[54].mxu1  ;;  %v2923_v19 = vpop.f32.mrb[55].mxu0  ;;  %v3430_v9 = vld [vmem:[#allocation9 + $0x10] ss:$8 sps:$4 sm:$0xff] (!%p2765_p8)   ;;  %2073 = vmatprep.subr.bf16.mxu0 (!%p2765_p8), %v3427_v7  ;;  %1801 = vmatpush1.bf16.msra.mxu1 (!%p2765_p8), %v3429_v8  ;;  %v3475_v5 = vld [vmem:[%s4294_s6 + $0x40] sm:$0xff] (!%p2765_p8)  }
 0x27a   : > { %v2924_v21 = vadd.f32 %v2923_v19, %v2922_v16  ;;  %v3035_v22 = vpop.f32.mrb[55].mxu1  ;;  %v3433_v11 = vld [vmem:[#allocation9 + $0x24] ss:$8 sps:$4 sm:$0xff] (!%p2765_p8)   ;;  %v3435_v12 = vld [vmem:[#allocation11 + $0x20] ss:$8 sps:$4 sm:$0xff] (!%p2765_p8)   ;;  %1802 = vmatprep.subr.bf16.mxu1 (!%p2765_p8), %v3431_v10  ;;  %v1528_v7 = vld [vmem:[#allocation2 + $0x90] sm:$0xff] (!%p2765_p8) }
 0x27b   : > { %v1420_v23 = vadd.f32 %v3033_v17, %v2921_v14  ;;  %v3036_v24 = vadd.f32 %v3035_v22, %v3034_v18  ;;  %v3436_v13 = vld [vmem:[#allocation9 + $0x20] ss:$8 sps:$4 sm:$0xff] (!%p2765_p8)   ;;  %v3437_v14 = vld [vmem:[#allocation11 + $0x34] ss:$8 sps:$4 sm:$0xff] (!%p2765_p8)   ;;  %v3441_v16 = vld [vmem:[#allocation11 + $0x30] ss:$8 sps:$4 sm:$0xff] (!%p2765_p8)  }
 0x27c   : > { %2074 = vmatpush1.bf16.msra.mxu0 (!%p2765_p8), %v3430_v9  ;;  %v3439_v15 = vld [vmem:[#allocation9 + $0x34] ss:$8 sps:$4 sm:$0xff] (!%p2765_p8)   ;;  %v3442_v17 = vld [vmem:[#allocation9 + $0x30] ss:$8 sps:$4 sm:$0xff] (!%p2765_p8)   ;;  %v3443_v18 = vld [vmem:[#allocation11 + $0x44] ss:$8 sps:$4 sm:$0xff] (!%p2765_p8)  }
 0x27d   : > { %v1468_v26 = vadd.f32 %v1420_v23, %v474_v20  ;;  %v1423_v27 = vadd.f32 %v3036_v24, %v2924_v21  ;;  %2075 = vmatprep.subr.bf16.mxu0 (!%p2765_p8), %v3433_v11  ;;  %1803 = vmatpush1.bf16.msra.mxu1 (!%p2765_p8), %v3435_v12  ;;  %v3445_v19 = vld [vmem:[#allocation9 + $0x44] ss:$8 sps:$4 sm:$0xff] (!%p2765_p8)   ;;  %v3447_v20 = vld [vmem:[#allocation11 + $0x40] ss:$8 sps:$4 sm:$0xff] (!%p2765_p8)   ;;  %v3449_v22 = vld [vmem:[#allocation11 + $0x54] ss:$8 sps:$4 sm:$0xff] (!%p2765_p8)  }
 0x27e   : > { %v2925_v28 = vpop.f32.mrb[56].mxu0  ;;  %1804 = vmatprep.subr.bf16.mxu1 (!%p2765_p8), %v3437_v14  ;;  %v3448_v21 = vld [vmem:[#allocation9 + $0x40] ss:$8 sps:$4 sm:$0xff] (!%p2765_p8)   ;;  %v3451_v23 = vld [vmem:[#allocation9 + $0x54] ss:$8 sps:$4 sm:$0xff] (!%p2765_p8)  }
 0x27f   : > { %1500 = vst [vmem:[#allocation2 + $0xd0] sm:$0xff] %v1468_v26  ;;  %v1469_v29 = vadd.f32 %v1423_v27, %v475_v25  ;;  %v3037_v30 = vpop.f32.mrb[56].mxu1  ;;  %v2926_v31 = vpop.f32.mrb[57].mxu0  ;;  %v3453_v24 = vld [vmem:[#allocation11 + $0x50] ss:$8 sps:$4 sm:$0xff] (!%p2765_p8)   ;;  %v3476_v9 = vld [vmem:[%s4294_s6 + $0x48] sm:$0xff] (!%p2765_p8)  }
 0x280   : > { %v2927_v32 = vadd.f32 %v2926_v31, %v2925_v28  ;;  %v3038_v33 = vpop.f32.mrb[57].mxu1  ;;  %v2928_v34 = vpop.f32.mrb[58].mxu0  ;;  %2076 = vmatpush1.bf16.msra.mxu0 (!%p2765_p8), %v3436_v13  ;;  %v3454_v25 = vld [vmem:[#allocation9 + $0x50] ss:$8 sps:$4 sm:$0xff] (!%p2765_p8)   ;;  %v3455_v26 = vld [vmem:[#allocation11 + $0x64] ss:$8 sps:$4 sm:$0xff] (!%p2765_p8)  }
 0x281   : > { %1501 = vst [vmem:[#allocation2 + $0xd8] sm:$0xff] %v1469_v29  ;;  %v3039_v35 = vadd.f32 %v3038_v33, %v3037_v30  ;;  %v3040_v36 = vpop.f32.mrb[58].mxu1  ;;  %v2929_v37 = vpop.f32.mrb[59].mxu0  ;;  %2077 = vmatprep.subr.bf16.mxu0 (!%p2765_p8), %v3439_v15  ;;  %1805 = vmatpush1.bf16.msra.mxu1 (!%p2765_p8), %v3441_v16  ;;  %v3457_v27 = vld [vmem:[#allocation9 + $0x64] ss:$8 sps:$4 sm:$0xff] (!%p2765_p8)   ;;  %v1529_v8 = vld [vmem:[#allocation2 + $0x98] sm:$0xff] (!%p2765_p8) }
 0x282   : > { %v2930_v39 = vadd.f32 %v2929_v37, %v2928_v34  ;;  %v3041_v40 = vpop.f32.mrb[59].mxu1  ;;  %1806 = vmatprep.subr.bf16.mxu1 (!%p2765_p8), %v3443_v18  ;;  %v3459_v28 = vld [vmem:[#allocation11 + $0x60] ss:$8 sps:$4 sm:$0xff] (!%p2765_p8)   ;;  %v3461_v30 = vld [vmem:[#allocation11 + $0x74] ss:$8 sps:$4 sm:$0xff] (!%p2765_p8)   ;;  %v1551_v10 = vpack.c.bf16 (!%p2765_p8), %v1529_v8, %v1528_v7 }
 0x283   : > { %v1428_v41 = vadd.f32 %v3039_v35, %v2927_v32  ;;  %v3042_v42 = vadd.f32 %v3041_v40, %v3040_v36  ;;  %v3460_v29 = vld [vmem:[#allocation9 + $0x60] ss:$8 sps:$4 sm:$0xff] (!%p2765_p8)   ;;  %v3463_v31 = vld [vmem:[#allocation9 + $0x74] ss:$8 sps:$4 sm:$0xff] (!%p2765_p8)   ;;  %v3465_v32 = vld [vmem:[#allocation11 + $0x70] ss:$8 sps:$4 sm:$0xff] (!%p2765_p8)  }
 0x284   : > { %2078 = vmatpush1.bf16.msra.mxu0 (!%p2765_p8), %v3442_v17  ;;  %v3466_v33 = vld [vmem:[#allocation9 + $0x70] ss:$8 sps:$4 sm:$0xff] (!%p2765_p8)   ;;  %v1510_v34 = vld [vmem:[#allocation2] sm:$0xff] (!%p2765_p8)  ;;  %v1511_v35 = vld [vmem:[#allocation2 + $0x8] sm:$0xff] (!%p2765_p8) }
 0x285   : > { %v1470_v44 = vadd.f32 %v1428_v41, %v476_v38  ;;  %v1431_v45 = vadd.f32 %v3042_v42, %v2930_v39  ;;  %2079 = vmatprep.subr.bf16.mxu0 (!%p2765_p8), %v3445_v19  ;;  %1807 = vmatpush1.bf16.msra.mxu1 (!%p2765_p8), %v3447_v20  ;;  %v3467_v36 = vld [vmem:[%s4294_s6] sm:$0xff] (!%p2765_p8)   ;;  %v1542_v37 = vpack.c.bf16 (!%p2765_p8), %v1511_v35, %v1510_v34  ;;  %v1512_v38 = vld [vmem:[#allocation2 + $0x10] sm:$0xff] (!%p2765_p8)  ;;  %v1513_v39 = vld [vmem:[#allocation2 + $0x18] sm:$0xff] (!%p2765_p8)  ;;  %v2266_v35 = vlaneseq (!%p2765_p8) }
 0x286   : > { %v2931_v46 = vpop.f32.mrb[60].mxu0  ;;  %1808 = vmatprep.subr.bf16.mxu1 (!%p2765_p8), %v3449_v22  ;;  %v3468_v40 = vld [vmem:[%s4294_s6 + $0x8] sm:$0xff] (!%p2765_p8)   ;;  %v1543_v41 = vpack.c.bf16 (!%p2765_p8), %v1513_v39, %v1512_v38  ;;  %v1514_v42 = vld [vmem:[#allocation2 + $0x20] sm:$0xff] (!%p2765_p8)  ;;  %v3477_v13 = vld [vmem:[%s4294_s6 + $0x50] sm:$0xff] (!%p2765_p8)  }
 0x287   : > { %1502 = vst [vmem:[#allocation2 + $0xe0] sm:$0xff] %v1470_v44  ;;  %v1471_v47 = vadd.f32 %v1431_v45, %v477_v43  ;;  %v3043_v48 = vpop.f32.mrb[60].mxu1  ;;  %v2932_v49 = vpop.f32.mrb[61].mxu0  ;;  %v1515_v43 = vld [vmem:[#allocation2 + $0x28] sm:$0xff] (!%p2765_p8)  ;;  %v3469_v44 = vld [vmem:[%s4294_s6 + $0x10] sm:$0xff] (!%p2765_p8)   ;;  %v1530_v11 = vld [vmem:[#allocation2 + $0xa0] sm:$0xff] (!%p2765_p8) }
 0x288   : > { %v2933_v50 = vadd.f32 %v2932_v49, %v2931_v46  ;;  %v3044_v51 = vpop.f32.mrb[61].mxu1  ;;  %v2934_v52 = vpop.f32.mrb[62].mxu0  ;;  %2080 = vmatpush1.bf16.msra.mxu0 (!%p2765_p8), %v3448_v21  ;;  %v1544_v45 = vpack.c.bf16 (!%p2765_p8), %v1515_v43, %v1514_v42  ;;  %v1516_v46 = vld [vmem:[#allocation2 + $0x30] sm:$0xff] (!%p2765_p8)  ;;  %v1531_v12 = vld [vmem:[#allocation2 + $0xa8] sm:$0xff] (!%p2765_p8)  ;;  %v1533_v16 = vld [vmem:[#allocation2 + $0xb8] sm:$0xff] (!%p2765_p8) }
 0x289   : > { %1503 = vst [vmem:[#allocation2 + $0xe8] sm:$0xff] %v1471_v47  ;;  %v3045_v53 = vadd.f32 %v3044_v51, %v3043_v48  ;;  %v3046_v54 = vpop.f32.mrb[62].mxu1  ;;  %v2935_v55 = vpop.f32.mrb[63].mxu0  ;;  %2081 = vmatprep.subr.bf16.mxu0 (!%p2765_p8), %v3451_v23  ;;  %1809 = vmatpush1.bf16.msra.mxu1 (!%p2765_p8), %v3453_v24  ;;  %v1517_v47 = vld [vmem:[#allocation2 + $0x38] sm:$0xff] (!%p2765_p8)  ;;  %v1519_v51 = vld [vmem:[#allocation2 + $0x48] sm:$0xff] (!%p2765_p8)  ;;  %v1552_v14 = vpack.c.bf16 (!%p2765_p8), %v1531_v12, %v1530_v11  ;;  %v1532_v15 = vld [vmem:[#allocation2 + $0xb0] sm:$0xff] (!%p2765_p8) }
 0x28a   : > { %v2936_v57 = vadd.f32 %v2935_v55, %v2934_v52  ;;  %v3047_v58 = vpop.f32.mrb[63].mxu1  ;;  %1810 = vmatprep.subr.bf16.mxu1 (!%p2765_p8), %v3455_v26  ;;  %v3470_v48 = vld [vmem:[%s4294_s6 + $0x18] sm:$0xff] (!%p2765_p8)   ;;  %v1545_v49 = vpack.c.bf16 (!%p2765_p8), %v1517_v47, %v1516_v46  ;;  %v3471_v52 = vld [vmem:[%s4294_s6 + $0x20] sm:$0xff] (!%p2765_p8)   ;;  %v1553_v18 = vpack.c.bf16 (!%p2765_p8), %v1533_v16, %v1532_v15  ;;  %v1535_v20 = vld [vmem:[#allocation2 + $0xc8] sm:$0xff] (!%p2765_p8) }
 0x28b   : > { %v1436_v59 = vadd.f32 %v3045_v53, %v2933_v50  ;;  %v3048_v60 = vadd.f32 %v3047_v58, %v3046_v54  ;;  %1509 = sbr.rel (%p2765_p8) target bundleno = 1005 (0x3ed), region = 76  ;;  %v1518_v50 = vld [vmem:[#allocation2 + $0x40] sm:$0xff] (!%p2765_p8)  ;;  %v1520_v54 = vld [vmem:[#allocation2 + $0x50] sm:$0xff] (!%p2765_p8)  ;;  %v1521_v55 = vld [vmem:[#allocation2 + $0x58] sm:$0xff] (!%p2765_p8) }
 0x28c   : > { %2082 = vmatpush1.bf16.msra.mxu0 (!%p2765_p8), %v3454_v25  ;;  %v1546_v53 = vpack.c.bf16 (!%p2765_p8), %v1519_v51, %v1518_v50  ;;  %v1522_v58 = vld [vmem:[#allocation2 + $0x60] sm:$0xff] (!%p2765_p8)  ;;  %v3478_v17 = vld [vmem:[%s4294_s6 + $0x58] sm:$0xff] (!%p2765_p8)   ;;  %v1536_v23 = vld [vmem:[#allocation2 + $0xd0] sm:$0xff] (!%p2765_p8) }
 0x28d   : > { %v1472_v62 = vadd.f32 %v1436_v59, %v478_v56  ;;  %v1439_v63 = vadd.f32 %v3048_v60, %v2936_v57  ;;  %2083 = vmatprep.subr.bf16.mxu0 (!%p2765_p8), %v3457_v27  ;;  %1811 = vmatpush1.bf16.msra.mxu1 (!%p2765_p8), %v3459_v28  ;;  %v3472_v56 = vld [vmem:[%s4294_s6 + $0x28] sm:$0xff] (!%p2765_p8)   ;;  %v1547_v57 = vpack.c.bf16 (!%p2765_p8), %v1521_v55, %v1520_v54  ;;  %v3473_v60 = vld [vmem:[%s4294_s6 + $0x30] sm:$0xff] (!%p2765_p8)   ;;  %v1534_v19 = vld [vmem:[#allocation2 + $0xc0] sm:$0xff] (!%p2765_p8) }
 0x28e   : > { %1812 = vmatprep.subr.bf16.mxu1 (!%p2765_p8), %v3461_v30  ;;  %v1523_v59 = vld [vmem:[#allocation2 + $0x68] sm:$0xff] (!%p2765_p8)  ;;  %v3479_v21 = vld [vmem:[%s4294_s6 + $0x60] sm:$0xff] (!%p2765_p8)   ;;  %v1554_v22 = vpack.c.bf16 (!%p2765_p8), %v1535_v20, %v1534_v19  ;;  %v1537_v24 = vld [vmem:[#allocation2 + $0xd8] sm:$0xff] (!%p2765_p8) }
 0x28f   : > { %1504 = vst [vmem:[#allocation2 + $0xf0] sm:$0xff] %v1472_v62  ;;  %v1473_v0 = vadd.f32 %v1439_v63, %v479_v61  ;;  %v1548_v61 = vpack.c.bf16 (!%p2765_p8), %v1523_v59, %v1522_v58  ;;  %v1524_v62 = vld [vmem:[#allocation2 + $0x70] sm:$0xff] (!%p2765_p8)  ;;  %v1525_v63 = vld [vmem:[#allocation2 + $0x78] sm:$0xff] (!%p2765_p8)  ;;  %v3480_v25 = vld [vmem:[%s4294_s6 + $0x68] sm:$0xff] (!%p2765_p8)   ;;  %v1555_v26 = vpack.c.bf16 (!%p2765_p8), %v1537_v24, %v1536_v23 }
 0x290   : > { %2084 = vmatpush1.bf16.msra.mxu0 (!%p2765_p8), %v3460_v29  ;;  %v1549_v1 = vpack.c.bf16 (!%p2765_p8), %v1525_v63, %v1524_v62  ;;  %v1538_v27 = vld [vmem:[#allocation2 + $0xe0] sm:$0xff] (!%p2765_p8)  ;;  %v1539_v28 = vld [vmem:[#allocation2 + $0xe8] sm:$0xff] (!%p2765_p8)  ;;  %v3481_v29 = vld [vmem:[%s4294_s6 + $0x70] sm:$0xff] (!%p2765_p8)  }
 0x291   : > { %1505 = vst [vmem:[#allocation2 + $0xf8] sm:$0xff] %v1473_v0  ;;  %2085 = vmatprep.subr.bf16.mxu0 (!%p2765_p8), %v3463_v31  ;;  %1813 = vmatpush1.bf16.msra.mxu1 (!%p2765_p8), %v3465_v32  ;;  %v3474_v0 = vld [vmem:[%s4294_s6 + $0x38] sm:$0xff] (!%p2765_p8)   ;;  %v1556_v30 = vpack.c.bf16 (!%p2765_p8), %v1539_v28, %v1538_v27  ;;  %v2264_v38 = vld [vmem:[#allocation12] sm:$0x3] (!%p2765_p8) }
 0x294   : > { %2086 = vmatpush1.bf16.msra.mxu0 %v3466_v33  ;;  %1831 = vmatmul.mubr.bf16.vlgmr.msra.gmra.mrb[0].mxu1 %v3467_v36  ;;  %v3482_v33 = vld [vmem:[%s4294_s6 + $0x78] sm:$0xff]   ;;  %v2267_v36 = vshrl.u32 %v2266_v35, 7 }
 0x295   : > { %1840 = vmatprep.mubr.bf16.mxu1 %v3835_v3 }
 0x296   : > { %v1540_v31 = vld [vmem:[#allocation2 + $0xf0] sm:$0xff]  ;;  %v2272_v39 = vsub.s32 1, %v2267_v36 }
 0x297   : > { %2104 = vmatmul.mubr.bf16.vlgmr.msra.gmra.mrb[0].mxu0 %v1542_v37  ;;  %v2268_v37 = vsub.s32 0, %v2267_v36 }
 0x298   : > { %2113 = vmatprep.mubr.bf16.mxu0 %v3835_v3  ;;  %v1541_v32 = vld [vmem:[#allocation2 + $0xf8] sm:$0xff]  ;;  %v4459_v43 = vrot.slane %v2264_v38, %v2272_v39 }
 0x299   : > { %v1557_v34 = vpack.c.bf16 %v1541_v32, %v1540_v31 }
 0x29c   : > { %1841 = vmatmul.mubr.bf16.gmra.mrb[4].mxu1 %v3468_v40  ;;  %v4457_v40 = vrot.slane %v2264_v38, %v2268_v37 }
 0x29d   : > { %1850 = vmatprep.mubr.bf16.mxu1 %v3835_v3 }
 0x29f   : > { %2114 = vmatmul.mubr.bf16.gmra.mrb[4].mxu0 %v1543_v41 }
 0x2a0   : > { %2123 = vmatprep.mubr.bf16.mxu0 %v3835_v3 }
 0x2a4   : > { %1851 = vmatmul.mubr.bf16.gmra.mrb[8].mxu1 %v3469_v44 }
 0x2a5   : > { %1860 = vmatprep.mubr.bf16.mxu1 %v3835_v3 }
 0x2a7   : > { %2124 = vmatmul.mubr.bf16.gmra.mrb[8].mxu0 %v1544_v45 }
 0x2a8   : > { %2133 = vmatprep.mubr.bf16.mxu0 %v3835_v3 }
 0x2ac   : > { %1861 = vmatmul.mubr.bf16.gmra.mrb[12].mxu1 %v3470_v48 }
 0x2ad   : > { %1870 = vmatprep.mubr.bf16.mxu1 %v3835_v3 }
 0x2af   : > { %2134 = vmatmul.mubr.bf16.gmra.mrb[12].mxu0 %v1545_v49 }
 0x2b0   : > { %2143 = vmatprep.mubr.bf16.mxu0 %v3835_v3 }
 0x2b4   : > { %1871 = vmatmul.mubr.bf16.gmra.mrb[16].mxu1 %v3471_v52 }
 0x2b5   : > { %1880 = vmatprep.mubr.bf16.mxu1 %v3835_v3 }
 0x2b7   : > { %2144 = vmatmul.mubr.bf16.gmra.mrb[16].mxu0 %v1546_v53 }
 0x2b8   : > { %2153 = vmatprep.mubr.bf16.mxu0 %v3835_v3 }
 0x2bc   : > { %1881 = vmatmul.mubr.bf16.gmra.mrb[20].mxu1 %v3472_v56 }
 0x2bd   : > { %1890 = vmatprep.mubr.bf16.mxu1 %v3835_v3 }
 0x2bf   : > { %2154 = vmatmul.mubr.bf16.gmra.mrb[20].mxu0 %v1547_v57 }
 0x2c0   : > { %2163 = vmatprep.mubr.bf16.mxu0 %v3835_v3 }
 0x2c4   : > { %1891 = vmatmul.mubr.bf16.gmra.mrb[24].mxu1 %v3473_v60 }
 0x2c5   : > { %1900 = vmatprep.mubr.bf16.mxu1 %v3835_v3 }
 0x2c7   : > { %2164 = vmatmul.mubr.bf16.gmra.mrb[24].mxu0 %v1548_v61 }
 0x2c8   : > { %2173 = vmatprep.mubr.bf16.mxu0 %v3835_v3 }
 0x2cc   : > { %1901 = vmatmul.mubr.bf16.gmra.mrb[28].mxu1 %v3474_v0 }
 0x2cd   : > { %1910 = vmatprep.mubr.bf16.mxu1 %v3835_v3 }
 0x2cf   : > { %2174 = vmatmul.mubr.bf16.gmra.mrb[28].mxu0 %v1549_v1 }
 0x2d0   : > { %2183 = vmatprep.mubr.bf16.mxu0 %v3835_v3 }
 0x2d4   : > { %1911 = vmatmul.mubr.bf16.gmra.mrb[32].mxu1 %v3475_v5 }
 0x2d5   : > { %1920 = vmatprep.mubr.bf16.mxu1 %v3835_v3 }
 0x2d7   : > { %2184 = vmatmul.mubr.bf16.gmra.mrb[32].mxu0 %v1550_v6 }
 0x2d8   : > { %2193 = vmatprep.mubr.bf16.mxu0 %v3835_v3 }
 0x2dc   : > { %1921 = vmatmul.mubr.bf16.gmra.mrb[36].mxu1 %v3476_v9 }
 0x2dd   : > { %1930 = vmatprep.mubr.bf16.mxu1 %v3835_v3 }
 0x2df   : > { %2194 = vmatmul.mubr.bf16.gmra.mrb[36].mxu0 %v1551_v10 }
 0x2e0   : > { %2203 = vmatprep.mubr.bf16.mxu0 %v3835_v3 }
 0x2e4   : > { %1931 = vmatmul.mubr.bf16.gmra.mrb[40].mxu1 %v3477_v13 }
 0x2e5   : > { %1940 = vmatprep.mubr.bf16.mxu1 %v3835_v3 }
 0x2e7   : > { %2204 = vmatmul.mubr.bf16.gmra.mrb[40].mxu0 %v1552_v14 }
 0x2e8   : > { %2213 = vmatprep.mubr.bf16.mxu0 %v3835_v3 }
 0x2ec   : > { %1941 = vmatmul.mubr.bf16.gmra.mrb[44].mxu1 %v3478_v17 }
 0x2ed   : > { %1950 = vmatprep.mubr.bf16.mxu1 %v3835_v3 }
 0x2ef   : > { %2214 = vmatmul.mubr.bf16.gmra.mrb[44].mxu0 %v1553_v18 }
 0x2f0   : > { %2223 = vmatprep.mubr.bf16.mxu0 %v3835_v3 }
 0x2f4   : > { %1951 = vmatmul.mubr.bf16.gmra.mrb[48].mxu1 %v3479_v21 }
 0x2f5   : > { %1960 = vmatprep.mubr.bf16.mxu1 %v3835_v3 }
 0x2f7   : > { %2224 = vmatmul.mubr.bf16.gmra.mrb[48].mxu0 %v1554_v22 }
 0x2f8   : > { %2233 = vmatprep.mubr.bf16.mxu0 %v3835_v3 }
 0x2fc   : > { %1961 = vmatmul.mubr.bf16.gmra.mrb[52].mxu1 %v3480_v25 }
 0x2fd   : > { %1970 = vmatprep.mubr.bf16.mxu1 %v3835_v3 }
 0x2ff   : > { %2234 = vmatmul.mubr.bf16.gmra.mrb[52].mxu0 %v1555_v26 }
 0x300   : > { %2243 = vmatprep.mubr.bf16.mxu0 %v3835_v3 }
 0x304   : > { %1971 = vmatmul.mubr.bf16.gmra.mrb[56].mxu1 %v3481_v29 }
 0x305   : > { %1980 = vmatprep.mubr.bf16.mxu1 %v3835_v3 }
 0x307   : > { %2244 = vmatmul.mubr.bf16.gmra.mrb[56].mxu0 %v1556_v30 }
 0x308   : > { %2253 = vmatprep.mubr.bf16.mxu0 %v3835_v3 }
 0x30c   : > { %1981 = vmatmul.mubr.bf16.gmra.mrb[60].mxu1 %v3482_v33 }
 0x30f   : > { %2254 = vmatmul.mubr.bf16.gmra.mrb[60].mxu0 %v1557_v34 }
 0x367   : > { %v1832_v41 = vpop.f32.mrb[0].mxu1 }
 0x368   : > { %v1834_v3 = vpop.f32.mrb[1].mxu1 }
 0x369   : > { %v1836_v47 = vpop.f32.mrb[2].mxu1 }
 0x36a   : > { %v2105_v42 = vpop.f32.mrb[0].mxu0  ;;  %v1838_v51 = vpop.f32.mrb[3].mxu1 }
 0x36b   : > { %v2106_v44 = vadd.f32 %v2105_v42, %v1832_v41  ;;  %v2107_v45 = vpop.f32.mrb[1].mxu0 }
 0x36c   : > { %v2108_v46 = vadd.f32 %v2107_v45, %v1834_v3  ;;  %v2109_v48 = vpop.f32.mrb[2].mxu0 }
 0x36d   : > { %v2276_v49 = vadd.f32 %v4457_v40, %v2106_v44  ;;  %v2110_v50 = vadd.f32 %v2109_v48, %v1836_v47  ;;  %v2111_v52 = vpop.f32.mrb[3].mxu0 }
 0x36e   : > { %v2277_v53 = vadd.f32 %v4459_v43, %v2108_v46  ;;  %v2112_v54 = vadd.f32 %v2111_v52, %v1838_v51 }
 0x36f   : > { %v2340_v55 = vmax.f32 %v2276_v49, 0.0  ;;  %v2278_v56 = vadd.f32 %v4457_v40, %v2110_v50  ;;  %v1842_v61 = vpop.f32.mrb[4].mxu1 }
 0x370   : > { %v2341_v57 = vmax.f32 %v2277_v53, 0.0  ;;  %v2279_v58 = vadd.f32 %v4459_v43, %v2112_v54  ;;  %v1844_v0 = vpop.f32.mrb[5].mxu1 }
 0x371   : > { %2404 = vst [vmem:[%s4309_s1] sm:$0xff] %v2340_v55  ;;  %v2342_v59 = vmax.f32 %v2278_v56, 0.0  ;;  %v1846_v4 = vpop.f32.mrb[6].mxu1 }
 0x372   : > { %2405 = vst [vmem:[%s4309_s1 + $0x8] sm:$0xff] %v2341_v57  ;;  %v2343_v60 = vmax.f32 %v2279_v58, 0.0  ;;  %v2115_v62 = vpop.f32.mrb[4].mxu0  ;;  %v1848_v8 = vpop.f32.mrb[7].mxu1 }
 0x373   : > { %2406 = vst [vmem:[%s4309_s1 + $0x10] sm:$0xff] %v2342_v59  ;;  %v2116_v63 = vadd.f32 %v2115_v62, %v1842_v61  ;;  %v2117_v1 = vpop.f32.mrb[5].mxu0 }
 0x374   : > { %2407 = vst [vmem:[%s4309_s1 + $0x18] sm:$0xff] %v2343_v60  ;;  %v2118_v2 = vadd.f32 %v2117_v1, %v1844_v0  ;;  %v2119_v5 = vpop.f32.mrb[6].mxu0 }
 0x375   : > { %v2280_v6 = vadd.f32 %v4457_v40, %v2116_v63  ;;  %v2120_v7 = vadd.f32 %v2119_v5, %v1846_v4  ;;  %v2121_v9 = vpop.f32.mrb[7].mxu0 }
 0x376   : > { %v2281_v10 = vadd.f32 %v4459_v43, %v2118_v2  ;;  %v2122_v11 = vadd.f32 %v2121_v9, %v1848_v8 }
 0x377   : > { %v2344_v12 = vmax.f32 %v2280_v6, 0.0  ;;  %v2282_v13 = vadd.f32 %v4457_v40, %v2120_v7  ;;  %v1852_v18 = vpop.f32.mrb[8].mxu1 }
 0x378   : > { %v2345_v14 = vmax.f32 %v2281_v10, 0.0  ;;  %v2283_v15 = vadd.f32 %v4459_v43, %v2122_v11  ;;  %v1854_v21 = vpop.f32.mrb[9].mxu1 }
 0x379   : > { %2408 = vst [vmem:[%s4309_s1 + $0x20] sm:$0xff] %v2344_v12  ;;  %v2346_v16 = vmax.f32 %v2282_v13, 0.0  ;;  %v1856_v24 = vpop.f32.mrb[10].mxu1 }
 0x37a   : > { %2409 = vst [vmem:[%s4309_s1 + $0x28] sm:$0xff] %v2345_v14  ;;  %v2347_v17 = vmax.f32 %v2283_v15, 0.0  ;;  %v2125_v19 = vpop.f32.mrb[8].mxu0  ;;  %v1858_v28 = vpop.f32.mrb[11].mxu1 }
 0x37b   : > { %2410 = vst [vmem:[%s4309_s1 + $0x30] sm:$0xff] %v2346_v16  ;;  %v2126_v20 = vadd.f32 %v2125_v19, %v1852_v18  ;;  %v2127_v22 = vpop.f32.mrb[9].mxu0 }
 0x37c   : > { %2411 = vst [vmem:[%s4309_s1 + $0x38] sm:$0xff] %v2347_v17  ;;  %v2128_v23 = vadd.f32 %v2127_v22, %v1854_v21  ;;  %v2129_v25 = vpop.f32.mrb[10].mxu0 }
 0x37d   : > { %v2284_v26 = vadd.f32 %v4457_v40, %v2126_v20  ;;  %v2130_v27 = vadd.f32 %v2129_v25, %v1856_v24  ;;  %v2131_v29 = vpop.f32.mrb[11].mxu0 }
 0x37e   : > { %v2285_v30 = vadd.f32 %v4459_v43, %v2128_v23  ;;  %v2132_v31 = vadd.f32 %v2131_v29, %v1858_v28 }
 0x37f   : > { %v2348_v32 = vmax.f32 %v2284_v26, 0.0  ;;  %v2286_v33 = vadd.f32 %v4457_v40, %v2130_v27  ;;  %v1862_v38 = vpop.f32.mrb[12].mxu1 }
 0x380   : > { %v2349_v34 = vmax.f32 %v2285_v30, 0.0  ;;  %v2287_v35 = vadd.f32 %v4459_v43, %v2132_v31  ;;  %v1864_v42 = vpop.f32.mrb[13].mxu1 }
 0x381   : > { %2412 = vst [vmem:[%s4309_s1 + $0x40] sm:$0xff] %v2348_v32  ;;  %v2350_v36 = vmax.f32 %v2286_v33, 0.0  ;;  %v1866_v45 = vpop.f32.mrb[14].mxu1 }
 0x382   : > { %2413 = vst [vmem:[%s4309_s1 + $0x48] sm:$0xff] %v2349_v34  ;;  %v2351_v37 = vmax.f32 %v2287_v35, 0.0  ;;  %v2135_v39 = vpop.f32.mrb[12].mxu0  ;;  %v1868_v49 = vpop.f32.mrb[15].mxu1 }
 0x383   : > { %2414 = vst [vmem:[%s4309_s1 + $0x50] sm:$0xff] %v2350_v36  ;;  %v2136_v41 = vadd.f32 %v2135_v39, %v1862_v38  ;;  %v2137_v44 = vpop.f32.mrb[13].mxu0 }
 0x384   : > { %2415 = vst [vmem:[%s4309_s1 + $0x58] sm:$0xff] %v2351_v37  ;;  %v2138_v3 = vadd.f32 %v2137_v44, %v1864_v42  ;;  %v2139_v46 = vpop.f32.mrb[14].mxu0 }
 0x385   : > { %v2288_v47 = vadd.f32 %v4457_v40, %v2136_v41  ;;  %v2140_v48 = vadd.f32 %v2139_v46, %v1866_v45  ;;  %v2141_v50 = vpop.f32.mrb[15].mxu0 }
 0x386   : > { %v2289_v51 = vadd.f32 %v4459_v43, %v2138_v3  ;;  %v2142_v52 = vadd.f32 %v2141_v50, %v1868_v49 }
 0x387   : > { %v2352_v53 = vmax.f32 %v2288_v47, 0.0  ;;  %v2290_v54 = vadd.f32 %v4457_v40, %v2140_v48  ;;  %v1872_v59 = vpop.f32.mrb[16].mxu1 }
 0x388   : > { %v2353_v55 = vmax.f32 %v2289_v51, 0.0  ;;  %v2291_v56 = vadd.f32 %v4459_v43, %v2142_v52  ;;  %v1874_v62 = vpop.f32.mrb[17].mxu1 }
 0x389   : > { %2416 = vst [vmem:[%s4309_s1 + $0x60] sm:$0xff] %v2352_v53  ;;  %v2354_v57 = vmax.f32 %v2290_v54, 0.0  ;;  %v1876_v1 = vpop.f32.mrb[18].mxu1 }
 0x38a   : > { %2417 = vst [vmem:[%s4309_s1 + $0x68] sm:$0xff] %v2353_v55  ;;  %v2355_v58 = vmax.f32 %v2291_v56, 0.0  ;;  %v2145_v60 = vpop.f32.mrb[16].mxu0  ;;  %v1878_v6 = vpop.f32.mrb[19].mxu1 }
 0x38b   : > { %2418 = vst [vmem:[%s4309_s1 + $0x70] sm:$0xff] %v2354_v57  ;;  %v2146_v61 = vadd.f32 %v2145_v60, %v1872_v59  ;;  %v2147_v63 = vpop.f32.mrb[17].mxu0 }
 0x38c   : > { %2419 = vst [vmem:[%s4309_s1 + $0x78] sm:$0xff] %v2355_v58  ;;  %v2148_v0 = vadd.f32 %v2147_v63, %v1874_v62  ;;  %v2149_v2 = vpop.f32.mrb[18].mxu0 }
 0x38d   : > { %v2292_v4 = vadd.f32 %v4457_v40, %v2146_v61  ;;  %v2150_v5 = vadd.f32 %v2149_v2, %v1876_v1  ;;  %v2151_v7 = vpop.f32.mrb[19].mxu0 }
 0x38e   : > { %v2293_v8 = vadd.f32 %v4459_v43, %v2148_v0  ;;  %v2152_v9 = vadd.f32 %v2151_v7, %v1878_v6 }
 0x38f   : > { %v2356_v10 = vmax.f32 %v2292_v4, 0.0  ;;  %v2294_v11 = vadd.f32 %v4457_v40, %v2150_v5  ;;  %v1882_v16 = vpop.f32.mrb[20].mxu1 }
 0x390   : > { %v2357_v12 = vmax.f32 %v2293_v8, 0.0  ;;  %v2295_v13 = vadd.f32 %v4459_v43, %v2152_v9  ;;  %v1884_v19 = vpop.f32.mrb[21].mxu1 }
 0x391   : > { %2420 = vst [vmem:[%s4309_s1 + $0x80] sm:$0xff] %v2356_v10  ;;  %v2358_v14 = vmax.f32 %v2294_v11, 0.0  ;;  %v1886_v22 = vpop.f32.mrb[22].mxu1 }
 0x392   : > { %2421 = vst [vmem:[%s4309_s1 + $0x88] sm:$0xff] %v2357_v12  ;;  %v2359_v15 = vmax.f32 %v2295_v13, 0.0  ;;  %v2155_v17 = vpop.f32.mrb[20].mxu0  ;;  %v1888_v26 = vpop.f32.mrb[23].mxu1 }
 0x393   : > { %2422 = vst [vmem:[%s4309_s1 + $0x90] sm:$0xff] %v2358_v14  ;;  %v2156_v18 = vadd.f32 %v2155_v17, %v1882_v16  ;;  %v2157_v20 = vpop.f32.mrb[21].mxu0 }
 0x394   : > { %2423 = vst [vmem:[%s4309_s1 + $0x98] sm:$0xff] %v2359_v15  ;;  %v2158_v21 = vadd.f32 %v2157_v20, %v1884_v19  ;;  %v2159_v23 = vpop.f32.mrb[22].mxu0 }
 0x395   : > { %v2296_v24 = vadd.f32 %v4457_v40, %v2156_v18  ;;  %v2160_v25 = vadd.f32 %v2159_v23, %v1886_v22  ;;  %v2161_v27 = vpop.f32.mrb[23].mxu0 }
 0x396   : > { %v2297_v28 = vadd.f32 %v4459_v43, %v2158_v21  ;;  %v2162_v29 = vadd.f32 %v2161_v27, %v1888_v26 }
 0x397   : > { %v2360_v30 = vmax.f32 %v2296_v24, 0.0  ;;  %v2298_v31 = vadd.f32 %v4457_v40, %v2160_v25  ;;  %v1892_v36 = vpop.f32.mrb[24].mxu1 }
 0x398   : > { %v2361_v32 = vmax.f32 %v2297_v28, 0.0  ;;  %v2299_v33 = vadd.f32 %v4459_v43, %v2162_v29  ;;  %v1894_v39 = vpop.f32.mrb[25].mxu1 }
 0x399   : > { %2424 = vst [vmem:[%s4309_s1 + $0xa0] sm:$0xff] %v2360_v30  ;;  %v2362_v34 = vmax.f32 %v2298_v31, 0.0  ;;  %v1896_v44 = vpop.f32.mrb[26].mxu1 }
 0x39a   : > { %2425 = vst [vmem:[%s4309_s1 + $0xa8] sm:$0xff] %v2361_v32  ;;  %v2363_v35 = vmax.f32 %v2299_v33, 0.0  ;;  %v2165_v37 = vpop.f32.mrb[24].mxu0  ;;  %v1898_v47 = vpop.f32.mrb[27].mxu1 }
 0x39b   : > { %2426 = vst [vmem:[%s4309_s1 + $0xb0] sm:$0xff] %v2362_v34  ;;  %v2166_v38 = vadd.f32 %v2165_v37, %v1892_v36  ;;  %v2167_v41 = vpop.f32.mrb[25].mxu0 }
 0x39c   : > { %2427 = vst [vmem:[%s4309_s1 + $0xb8] sm:$0xff] %v2363_v35  ;;  %v2168_v42 = vadd.f32 %v2167_v41, %v1894_v39  ;;  %v2169_v3 = vpop.f32.mrb[26].mxu0 }
 0x39d   : > { %v2300_v45 = vadd.f32 %v4457_v40, %v2166_v38  ;;  %v2170_v46 = vadd.f32 %v2169_v3, %v1896_v44  ;;  %v2171_v48 = vpop.f32.mrb[27].mxu0 }
 0x39e   : > { %v2301_v49 = vadd.f32 %v4459_v43, %v2168_v42  ;;  %v2172_v50 = vadd.f32 %v2171_v48, %v1898_v47 }
 0x39f   : > { %v2364_v51 = vmax.f32 %v2300_v45, 0.0  ;;  %v2302_v52 = vadd.f32 %v4457_v40, %v2170_v46  ;;  %v1902_v57 = vpop.f32.mrb[28].mxu1 }
 0x3a0   : > { %v2365_v53 = vmax.f32 %v2301_v49, 0.0  ;;  %v2303_v54 = vadd.f32 %v4459_v43, %v2172_v50  ;;  %v1904_v60 = vpop.f32.mrb[29].mxu1 }
 0x3a1   : > { %2428 = vst [vmem:[%s4309_s1 + $0xc0] sm:$0xff] %v2364_v51  ;;  %v2366_v55 = vmax.f32 %v2302_v52, 0.0  ;;  %v1906_v63 = vpop.f32.mrb[30].mxu1 }
 0x3a2   : > { %2429 = vst [vmem:[%s4309_s1 + $0xc8] sm:$0xff] %v2365_v53  ;;  %v2367_v56 = vmax.f32 %v2303_v54, 0.0  ;;  %v2175_v58 = vpop.f32.mrb[28].mxu0  ;;  %v1908_v4 = vpop.f32.mrb[31].mxu1 }
 0x3a3   : > { %2430 = vst [vmem:[%s4309_s1 + $0xd0] sm:$0xff] %v2366_v55  ;;  %v2176_v59 = vadd.f32 %v2175_v58, %v1902_v57  ;;  %v2177_v61 = vpop.f32.mrb[29].mxu0 }
 0x3a4   : > { %2431 = vst [vmem:[%s4309_s1 + $0xd8] sm:$0xff] %v2367_v56  ;;  %v2178_v62 = vadd.f32 %v2177_v61, %v1904_v60  ;;  %v2179_v0 = vpop.f32.mrb[30].mxu0 }
 0x3a5   : > { %v2304_v1 = vadd.f32 %v4457_v40, %v2176_v59  ;;  %v2180_v2 = vadd.f32 %v2179_v0, %v1906_v63  ;;  %v2181_v5 = vpop.f32.mrb[31].mxu0 }
 0x3a6   : > { %v2305_v6 = vadd.f32 %v4459_v43, %v2178_v62  ;;  %v2182_v7 = vadd.f32 %v2181_v5, %v1908_v4 }
 0x3a7   : > { %v2368_v8 = vmax.f32 %v2304_v1, 0.0  ;;  %v2306_v9 = vadd.f32 %v4457_v40, %v2180_v2  ;;  %v1912_v14 = vpop.f32.mrb[32].mxu1 }
 0x3a8   : > { %v2369_v10 = vmax.f32 %v2305_v6, 0.0  ;;  %v2307_v11 = vadd.f32 %v4459_v43, %v2182_v7  ;;  %v1914_v17 = vpop.f32.mrb[33].mxu1 }
 0x3a9   : > { %2432 = vst [vmem:[%s4309_s1 + $0xe0] sm:$0xff] %v2368_v8  ;;  %v2370_v12 = vmax.f32 %v2306_v9, 0.0  ;;  %v1916_v20 = vpop.f32.mrb[34].mxu1 }
 0x3aa   : > { %2433 = vst [vmem:[%s4309_s1 + $0xe8] sm:$0xff] %v2369_v10  ;;  %v2371_v13 = vmax.f32 %v2307_v11, 0.0  ;;  %v2185_v15 = vpop.f32.mrb[32].mxu0  ;;  %v1918_v24 = vpop.f32.mrb[35].mxu1 }
 0x3ab   : > { %2434 = vst [vmem:[%s4309_s1 + $0xf0] sm:$0xff] %v2370_v12  ;;  %v2186_v16 = vadd.f32 %v2185_v15, %v1912_v14  ;;  %v2187_v18 = vpop.f32.mrb[33].mxu0 }
 0x3ac   : > { %2435 = vst [vmem:[%s4309_s1 + $0xf8] sm:$0xff] %v2371_v13  ;;  %v2188_v19 = vadd.f32 %v2187_v18, %v1914_v17  ;;  %v2189_v21 = vpop.f32.mrb[34].mxu0 }
 0x3ad   : > { %v2308_v22 = vadd.f32 %v4457_v40, %v2186_v16  ;;  %v2190_v23 = vadd.f32 %v2189_v21, %v1916_v20  ;;  %v2191_v25 = vpop.f32.mrb[35].mxu0 }
 0x3ae   : > { %v2309_v26 = vadd.f32 %v4459_v43, %v2188_v19  ;;  %v2192_v27 = vadd.f32 %v2191_v25, %v1918_v24 }
 0x3af   : > { %v2372_v28 = vmax.f32 %v2308_v22, 0.0  ;;  %v2310_v29 = vadd.f32 %v4457_v40, %v2190_v23  ;;  %v1922_v34 = vpop.f32.mrb[36].mxu1 }
 0x3b0   : > { %v2373_v30 = vmax.f32 %v2309_v26, 0.0  ;;  %v2311_v31 = vadd.f32 %v4459_v43, %v2192_v27  ;;  %v1924_v37 = vpop.f32.mrb[37].mxu1 }
 0x3b1   : > { %2436 = vst [vmem:[%s4309_s1 + $0x100] sm:$0xff] %v2372_v28  ;;  %v2374_v32 = vmax.f32 %v2310_v29, 0.0  ;;  %v1926_v41 = vpop.f32.mrb[38].mxu1 }
 0x3b2   : > { %2437 = vst [vmem:[%s4309_s1 + $0x108] sm:$0xff] %v2373_v30  ;;  %v2375_v33 = vmax.f32 %v2311_v31, 0.0  ;;  %v2195_v35 = vpop.f32.mrb[36].mxu0  ;;  %v1928_v45 = vpop.f32.mrb[39].mxu1 }
 0x3b3   : > { %2438 = vst [vmem:[%s4309_s1 + $0x110] sm:$0xff] %v2374_v32  ;;  %v2196_v36 = vadd.f32 %v2195_v35, %v1922_v34  ;;  %v2197_v38 = vpop.f32.mrb[37].mxu0 }
 0x3b4   : > { %2439 = vst [vmem:[%s4309_s1 + $0x118] sm:$0xff] %v2375_v33  ;;  %v2198_v39 = vadd.f32 %v2197_v38, %v1924_v37  ;;  %v2199_v42 = vpop.f32.mrb[38].mxu0 }
 0x3b5   : > { %v2312_v44 = vadd.f32 %v4457_v40, %v2196_v36  ;;  %v2200_v3 = vadd.f32 %v2199_v42, %v1926_v41  ;;  %v2201_v46 = vpop.f32.mrb[39].mxu0 }
 0x3b6   : > { %v2313_v47 = vadd.f32 %v4459_v43, %v2198_v39  ;;  %v2202_v48 = vadd.f32 %v2201_v46, %v1928_v45 }
 0x3b7   : > { %v2376_v49 = vmax.f32 %v2312_v44, 0.0  ;;  %v2314_v50 = vadd.f32 %v4457_v40, %v2200_v3  ;;  %v1932_v55 = vpop.f32.mrb[40].mxu1 }
 0x3b8   : > { %v2377_v51 = vmax.f32 %v2313_v47, 0.0  ;;  %v2315_v52 = vadd.f32 %v4459_v43, %v2202_v48  ;;  %v1934_v58 = vpop.f32.mrb[41].mxu1 }
 0x3b9   : > { %2440 = vst [vmem:[%s4309_s1 + $0x120] sm:$0xff] %v2376_v49  ;;  %v2378_v53 = vmax.f32 %v2314_v50, 0.0  ;;  %v1936_v61 = vpop.f32.mrb[42].mxu1 }
 0x3ba   : > { %2441 = vst [vmem:[%s4309_s1 + $0x128] sm:$0xff] %v2377_v51  ;;  %v2379_v54 = vmax.f32 %v2315_v52, 0.0  ;;  %v2205_v56 = vpop.f32.mrb[40].mxu0  ;;  %v1938_v1 = vpop.f32.mrb[43].mxu1 }
 0x3bb   : > { %2442 = vst [vmem:[%s4309_s1 + $0x130] sm:$0xff] %v2378_v53  ;;  %v2206_v57 = vadd.f32 %v2205_v56, %v1932_v55  ;;  %v2207_v59 = vpop.f32.mrb[41].mxu0 }
 0x3bc   : > { %2443 = vst [vmem:[%s4309_s1 + $0x138] sm:$0xff] %v2379_v54  ;;  %v2208_v60 = vadd.f32 %v2207_v59, %v1934_v58  ;;  %v2209_v62 = vpop.f32.mrb[42].mxu0 }
 0x3bd   : > { %v2316_v63 = vadd.f32 %v4457_v40, %v2206_v57  ;;  %v2210_v0 = vadd.f32 %v2209_v62, %v1936_v61  ;;  %v2211_v2 = vpop.f32.mrb[43].mxu0 }
 0x3be   : > { %v2317_v4 = vadd.f32 %v4459_v43, %v2208_v60  ;;  %v2212_v5 = vadd.f32 %v2211_v2, %v1938_v1 }
 0x3bf   : > { %v2380_v6 = vmax.f32 %v2316_v63, 0.0  ;;  %v2318_v7 = vadd.f32 %v4457_v40, %v2210_v0  ;;  %v1942_v12 = vpop.f32.mrb[44].mxu1 }
 0x3c0   : > { %v2381_v8 = vmax.f32 %v2317_v4, 0.0  ;;  %v2319_v9 = vadd.f32 %v4459_v43, %v2212_v5  ;;  %v1944_v15 = vpop.f32.mrb[45].mxu1 }
 0x3c1   : > { %2444 = vst [vmem:[%s4309_s1 + $0x140] sm:$0xff] %v2380_v6  ;;  %v2382_v10 = vmax.f32 %v2318_v7, 0.0  ;;  %v1946_v18 = vpop.f32.mrb[46].mxu1 }
 0x3c2   : > { %2445 = vst [vmem:[%s4309_s1 + $0x148] sm:$0xff] %v2381_v8  ;;  %v2383_v11 = vmax.f32 %v2319_v9, 0.0  ;;  %v2215_v13 = vpop.f32.mrb[44].mxu0  ;;  %v1948_v22 = vpop.f32.mrb[47].mxu1 }
 0x3c3   : > { %2446 = vst [vmem:[%s4309_s1 + $0x150] sm:$0xff] %v2382_v10  ;;  %v2216_v14 = vadd.f32 %v2215_v13, %v1942_v12  ;;  %v2217_v16 = vpop.f32.mrb[45].mxu0 }
 0x3c4   : > { %2447 = vst [vmem:[%s4309_s1 + $0x158] sm:$0xff] %v2383_v11  ;;  %v2218_v17 = vadd.f32 %v2217_v16, %v1944_v15  ;;  %v2219_v19 = vpop.f32.mrb[46].mxu0 }
 0x3c5   : > { %v2320_v20 = vadd.f32 %v4457_v40, %v2216_v14  ;;  %v2220_v21 = vadd.f32 %v2219_v19, %v1946_v18  ;;  %v2221_v23 = vpop.f32.mrb[47].mxu0 }
 0x3c6   : > { %v2321_v24 = vadd.f32 %v4459_v43, %v2218_v17  ;;  %v2222_v25 = vadd.f32 %v2221_v23, %v1948_v22 }
 0x3c7   : > { %v2384_v26 = vmax.f32 %v2320_v20, 0.0  ;;  %v2322_v27 = vadd.f32 %v4457_v40, %v2220_v21  ;;  %v1952_v32 = vpop.f32.mrb[48].mxu1 }
 0x3c8   : > { %v2385_v28 = vmax.f32 %v2321_v24, 0.0  ;;  %v2323_v29 = vadd.f32 %v4459_v43, %v2222_v25  ;;  %v1954_v35 = vpop.f32.mrb[49].mxu1 }
 0x3c9   : > { %2448 = vst [vmem:[%s4309_s1 + $0x160] sm:$0xff] %v2384_v26  ;;  %v2386_v30 = vmax.f32 %v2322_v27, 0.0  ;;  %v1956_v38 = vpop.f32.mrb[50].mxu1 }
 0x3ca   : > { %2449 = vst [vmem:[%s4309_s1 + $0x168] sm:$0xff] %v2385_v28  ;;  %v2387_v31 = vmax.f32 %v2323_v29, 0.0  ;;  %v2225_v33 = vpop.f32.mrb[48].mxu0  ;;  %v1958_v44 = vpop.f32.mrb[51].mxu1 }
 0x3cb   : > { %2450 = vst [vmem:[%s4309_s1 + $0x170] sm:$0xff] %v2386_v30  ;;  %v2226_v34 = vadd.f32 %v2225_v33, %v1952_v32  ;;  %v2227_v36 = vpop.f32.mrb[49].mxu0 }
 0x3cc   : > { %2451 = vst [vmem:[%s4309_s1 + $0x178] sm:$0xff] %v2387_v31  ;;  %v2228_v37 = vadd.f32 %v2227_v36, %v1954_v35  ;;  %v2229_v39 = vpop.f32.mrb[50].mxu0 }
 0x3cd   : > { %v2324_v41 = vadd.f32 %v4457_v40, %v2226_v34  ;;  %v2230_v42 = vadd.f32 %v2229_v39, %v1956_v38  ;;  %v2231_v3 = vpop.f32.mrb[51].mxu0 }
 0x3ce   : > { %v2325_v45 = vadd.f32 %v4459_v43, %v2228_v37  ;;  %v2232_v46 = vadd.f32 %v2231_v3, %v1958_v44 }
 0x3cf   : > { %v2388_v47 = vmax.f32 %v2324_v41, 0.0  ;;  %v2326_v48 = vadd.f32 %v4457_v40, %v2230_v42  ;;  %v1962_v53 = vpop.f32.mrb[52].mxu1 }
 0x3d0   : > { %v2389_v49 = vmax.f32 %v2325_v45, 0.0  ;;  %v2327_v50 = vadd.f32 %v4459_v43, %v2232_v46  ;;  %v1964_v56 = vpop.f32.mrb[53].mxu1 }
 0x3d1   : > { %2452 = vst [vmem:[%s4309_s1 + $0x180] sm:$0xff] %v2388_v47  ;;  %v2390_v51 = vmax.f32 %v2326_v48, 0.0  ;;  %v1966_v59 = vpop.f32.mrb[54].mxu1 }
 0x3d2   : > { %2453 = vst [vmem:[%s4309_s1 + $0x188] sm:$0xff] %v2389_v49  ;;  %v2391_v52 = vmax.f32 %v2327_v50, 0.0  ;;  %v2235_v54 = vpop.f32.mrb[52].mxu0  ;;  %v1968_v63 = vpop.f32.mrb[55].mxu1 }
 0x3d3   : > { %2454 = vst [vmem:[%s4309_s1 + $0x190] sm:$0xff] %v2390_v51  ;;  %v2236_v55 = vadd.f32 %v2235_v54, %v1962_v53  ;;  %v2237_v57 = vpop.f32.mrb[53].mxu0 }
 0x3d4   : > { %2455 = vst [vmem:[%s4309_s1 + $0x198] sm:$0xff] %v2391_v52  ;;  %v2238_v58 = vadd.f32 %v2237_v57, %v1964_v56  ;;  %v2239_v60 = vpop.f32.mrb[54].mxu0 }
 0x3d5   : > { %v2328_v61 = vadd.f32 %v4457_v40, %v2236_v55  ;;  %v2240_v62 = vadd.f32 %v2239_v60, %v1966_v59  ;;  %v2241_v0 = vpop.f32.mrb[55].mxu0 }
 0x3d6   : > { %v2329_v1 = vadd.f32 %v4459_v43, %v2238_v58  ;;  %v2242_v2 = vadd.f32 %v2241_v0, %v1968_v63 }
 0x3d7   : > { %v2392_v4 = vmax.f32 %v2328_v61, 0.0  ;;  %v2330_v5 = vadd.f32 %v4457_v40, %v2240_v62  ;;  %v1972_v10 = vpop.f32.mrb[56].mxu1 }
 0x3d8   : > { %v2393_v6 = vmax.f32 %v2329_v1, 0.0  ;;  %v2331_v7 = vadd.f32 %v4459_v43, %v2242_v2  ;;  %v1974_v13 = vpop.f32.mrb[57].mxu1 }
 0x3d9   : > { %2456 = vst [vmem:[%s4309_s1 + $0x1a0] sm:$0xff] %v2392_v4  ;;  %v2394_v8 = vmax.f32 %v2330_v5, 0.0  ;;  %v1976_v16 = vpop.f32.mrb[58].mxu1 }
 0x3da   : > { %2457 = vst [vmem:[%s4309_s1 + $0x1a8] sm:$0xff] %v2393_v6  ;;  %v2395_v9 = vmax.f32 %v2331_v7, 0.0  ;;  %v2245_v11 = vpop.f32.mrb[56].mxu0  ;;  %v1978_v20 = vpop.f32.mrb[59].mxu1 }
 0x3db   : > { %2458 = vst [vmem:[%s4309_s1 + $0x1b0] sm:$0xff] %v2394_v8  ;;  %v2246_v12 = vadd.f32 %v2245_v11, %v1972_v10  ;;  %v2247_v14 = vpop.f32.mrb[57].mxu0 }
 0x3dc   : > { %2459 = vst [vmem:[%s4309_s1 + $0x1b8] sm:$0xff] %v2395_v9  ;;  %v2248_v15 = vadd.f32 %v2247_v14, %v1974_v13  ;;  %v2249_v17 = vpop.f32.mrb[58].mxu0 }
 0x3dd   : > { %v2332_v18 = vadd.f32 %v4457_v40, %v2246_v12  ;;  %v2250_v19 = vadd.f32 %v2249_v17, %v1976_v16  ;;  %v2251_v21 = vpop.f32.mrb[59].mxu0 }
 0x3de   : > { %v2333_v22 = vadd.f32 %v4459_v43, %v2248_v15  ;;  %v2252_v23 = vadd.f32 %v2251_v21, %v1978_v20 }
 0x3df   : > { %v2396_v24 = vmax.f32 %v2332_v18, 0.0  ;;  %v2334_v25 = vadd.f32 %v4457_v40, %v2250_v19  ;;  %v1982_v30 = vpop.f32.mrb[60].mxu1 }
 0x3e0   : > { %v2397_v26 = vmax.f32 %v2333_v22, 0.0  ;;  %v2335_v27 = vadd.f32 %v4459_v43, %v2252_v23  ;;  %v1984_v33 = vpop.f32.mrb[61].mxu1 }
 0x3e1   : > { %2460 = vst [vmem:[%s4309_s1 + $0x1c0] sm:$0xff] %v2396_v24  ;;  %v2398_v28 = vmax.f32 %v2334_v25, 0.0  ;;  %v1986_v36 = vpop.f32.mrb[62].mxu1 }
 0x3e2   : > { %2461 = vst [vmem:[%s4309_s1 + $0x1c8] sm:$0xff] %v2397_v26  ;;  %v2399_v29 = vmax.f32 %v2335_v27, 0.0  ;;  %v2255_v31 = vpop.f32.mrb[60].mxu0  ;;  %v1988_v41 = vpop.f32.mrb[63].mxu1 }
 0x3e3   : > { %2462 = vst [vmem:[%s4309_s1 + $0x1d0] sm:$0xff] %v2398_v28  ;;  %v2256_v32 = vadd.f32 %v2255_v31, %v1982_v30  ;;  %v2257_v34 = vpop.f32.mrb[61].mxu0 }
 0x3e4   : > { %2463 = vst [vmem:[%s4309_s1 + $0x1d8] sm:$0xff] %v2399_v29  ;;  %v2258_v35 = vadd.f32 %v2257_v34, %v1984_v33  ;;  %v2259_v37 = vpop.f32.mrb[62].mxu0 }
 0x3e5   : > { %v2336_v38 = vadd.f32 %v4457_v40, %v2256_v32  ;;  %v2260_v39 = vadd.f32 %v2259_v37, %v1986_v36  ;;  %v2261_v42 = vpop.f32.mrb[63].mxu0 }
 0x3e6   : > { %v2337_v44 = vadd.f32 %v4459_v43, %v2258_v35  ;;  %v2262_v3 = vadd.f32 %v2261_v42, %v1988_v41 }
 0x3e7   : > { %v2400_v45 = vmax.f32 %v2336_v38, 0.0  ;;  %v2338_v46 = vadd.f32 %v4457_v40, %v2260_v39 }
 0x3e8   : > { %v2401_v47 = vmax.f32 %v2337_v44, 0.0  ;;  %v2339_v48 = vadd.f32 %v4459_v43, %v2262_v3 }
 0x3e9   : > { %2464 = vst [vmem:[%s4309_s1 + $0x1e0] sm:$0xff] %v2400_v45  ;;  %v2402_v49 = vmax.f32 %v2338_v46, 0.0 }
 0x3ea   : > { %2465 = vst [vmem:[%s4309_s1 + $0x1e8] sm:$0xff] %v2401_v47  ;;  %v2403_v50 = vmax.f32 %v2339_v48, 0.0 }
 0x3eb   : > { %2466 = vst [vmem:[%s4309_s1 + $0x1f0] sm:$0xff] %v2402_v49 }
 0x3ec   : > { %2467 = vst [vmem:[%s4309_s1 + $0x1f8] sm:$0xff] %v2403_v50 }
 0x3ed PF: > { %s4762_s12 = sld [smem:[#allocation25_spill]]  ;;  %s2483_s14 = sshll.u32 %s4309_s1, 4  ;;  %s4596_s14 = int_to_ptr.vmem [resolvable:$true] %s2483_s14 }
 0x3ee   : > { %s4763_s2 = sld [smem:[#allocation34_spill]]  ;;  %s2469_s26 = scalar_lea.sflag [#allocation5], %s4291_s18 }
 0x3ef   : > { %s3657_s21 = scalar_lea.vmem %s4596_s14, 8192  ;;  %p4764_p2 = scmp.ne.s32.totalorder %s4741_s24, 0 }
 0x3f0   : > { %p3658_p4 = scmp.ne.s32.totalorder %s4596_s14, %s3657_s21  ;;  %s3836_s16 = smov [#allocation14]  }
 0x3f1   : > { %s3661_s6 = sshll.u32 %s3836_s16, 4  ;;  %s3662_s6 = int_to_ptr.vmem [resolvable:$false] %s3661_s6 }
 0x3f2   : > { %p3659_p0 = pnand %p3658_p4, %p4764_p2  ;;  %s3663_s30 = scalar_lea.vmem %s3662_s6, 16384 }
 0x3f3   : > { %s2824_s17 = sshll.u32 %s4762_s12, 13  ;;  %p3664_p9 = scmp.lt.s32.totalorder %s4596_s14, %s3662_s6 }
 0x3f4   : > { %s4593_s19 = scalar_lea.hbm %s4763_s2, %s2824_s17  ;;  %p3660_p5 = pneg %p3659_p0 }
 0x3f5   : > { %p3665_p13 = scmp.lt.s32.totalorder %s3663_s30, %s3657_s21 }
 0x3f7   : > { %p3666_p12 = por %p3665_p13, %p3664_p9 }
 0x3f9   : > { %p3667_p1 = pnand %p3666_p12, %p3660_p5 }
 0x3fb   : > { %3670 = shalt.err (!%p3667_p1)
}
 0x3fc   : > { %s3671_s1 = scalar_lea.hbm %s4593_s19, 8192  ;;  %s3675_s12 = scalar_lea.hbm %s4763_s2, 32768 }
 0x3fd   : > { %p3672_p10 = scmp.ne.s32.totalorder %s4593_s19, %s3671_s1  ;;  %p3676_p3 = scmp.lt.u32.totalorder %s4593_s19, %s4763_s2 }
 0x3fe   : > { %p3677_p11 = scmp.lt.u32.totalorder %s3675_s12, %s3671_s1  ;;  %p3679_p4 = scmp.lt.u32.totalorder %s3671_s1, %s4593_s19 }
 0x3ff   : > { %p3673_p6 = pnand %p3672_p10, %p4764_p2 }
 0x400   : > { %p3678_p8 = por %p3677_p11, %p3676_p3 }
 0x401   : > { %p3674_p7 = pneg %p3673_p6 }
 0x402   : > { %p3680_p0 = por %p3679_p4, %p3678_p8 }
 0x404   : > { %p3681_p5 = pnand %p3680_p0, %p3674_p7 }
 0x406   : > { %3684 = shalt.err (!%p3681_p5)
}
 0x407   : > { %s3837_s27 = smov 256   ;;  %s3838_s21 = smov 16  }
 0x408   : > { %3131 = dma.vmem_to_hbm [thread:$0]  (%p4764_p2), %s4596_s14, 8192, %s4593_s19, %s2469_s26, %s3837_s27, %s3837_s27, %s3838_s21  }
 0x409 PF: > { %s4765_s16 = sld [smem:[#allocation21_spill]]  ;;  %p3164_p9 = scmp.ge.s32.totalorder %s3819_s10, 2 }
 0x40a   : > { %p4766_p13 = scmp.ne.s32.totalorder %s4744_s20, 0 }
 0x40c   : > { %p3154_p12 = pnand %p3164_p9, %p4766_p13 }
 0x40f   : > { %s2498_s6 = sand.u32 1, %s4765_s16  }
 0x410   : > { %s2499_s30 = scalar_lea.sflag [#allocation5], %s2498_s6 }
 0x411   : > { %3762 = dma.done.wait (!%p3154_p12), %s2499_s30, 8192  }
 0x412   : > { %3764 = vsyncadd (!%p3154_p12), %s2499_s30, 4294959104  ;;  %s27_s10 = sadd.s32 1, %s3819_s10   ;;  %s4768_s24 = sld [smem:[#allocation22_spill]] }
 0x413   : > { %p4627_p1 = scmp.ge.s32.totalorder %s27_s10, 10   ;;  %s4769_s25 = sld [smem:[#allocation23_spill]] }
 0x414   : > { %s4770_s26 = sld [smem:[#allocation29_spill]]  ;;  %s4771_s20 = sld [smem:[#allocation27_spill]] }
 0x415   : > { %s4772_s18 = sld [smem:[#allocation28_spill]]  ;;  %s4773_s21 = smov %s3771_s22 }
 0x416   : > { %s4774_s22 = smov %s3775_s23  ;;  %s4775_s23 = smov %s4201_s7 }
 0x417   : > { %s4776_s27 = smov %s3795_s28  ;;  %s4777_s28 = smov %s3799_s29 }
 0x418   : > { %s4778_s29 = smov %s4132_s15  ;;  %s4779_s30 = smov %s3811_s8 }
 0x419   : > { %s4780_s7 = smov %s3815_s9  ;;  %26 = sbr.rel (!%p4627_p1) target bundleno = 19 (0x13), region = 133 }
 0x41a   : > { %s4781_s8 = smov %s4771_s20 }
 0x41b   : > { %s4782_s9 = smov %s4772_s18 }
 0x420   :  { %2504 = vsyncpa [#allocation4], 1 }
 0x421   :  { %2506 = vsyncpa [#allocation4 + $0x1], 1 }
 0x422   :  { %2507 = vsyncpa [#allocation7], 1 }
 0x423   :  { %2509 = vsyncpa [#allocation7 + $0x1], 1 }
 0x424   :  { %2510 = vsyncpa [#allocation10], 1 }
 0x425   :  { %2511 = vsyncpa [#allocation13], 1 }
 0x426   :  { %2512 = vsyncpa [#allocation5], 1 }
 0x427   :  { %2514 = vsyncpa [#allocation5 + $0x1], 1 }

</bundles_post_ra>
